<compile_context>
chip_gen: v7x
topology: tpu7x:2x2x1
jax: 0.10.0
libtpu: 0.0.40
codegen_flags: <defaults>
</compile_context>

<pallas_src>
import numpy as np

import jax
import jax.numpy as jnp
from jax.experimental import pallas as pl
from jax.experimental.pallas import tpu as pltpu

EPS = 1e-5
LRELU_SLOPE = 0.2


def _pick_batch_tile(n, cap=8):
  """Samples folded per grid step (into the matmul sublane dim).

  Cap keeps VMEM bounded and leaves >=2 grid steps for v7x's two TensorCores
  once the batch is large; at tiny batch we fold everything (M maximisation).
  """
  for t in range(min(n, cap), 0, -1):
    if n % t == 0:
      return t
  return 1


# ----------------------------------------------------------------------------
# Fused kernel
# ----------------------------------------------------------------------------
def _make_fused_kernel(num_blocks, strides, eps, slope):
  """Builds the fused kernel.

  Ref layout (positional):
    [x] + num_blocks * [W, P, PT, gamma, beta] + [Wts, b_scores]
    + num_blocks * [feat_out] + [scores_out]
  where (per block, M = Wo*Cout):
    x      : (Nt, H', L)           bf16  lane-dense rows; block-0 stride-2 row
                                         pairs are pre-folded by the wrapper
    W      : (K, 2M or 3M)         bf16  width-folded conv weight, kh taps
                                         split along the output lane dim
    P      : (M, Cout)             f32   0/1 pooling  (lane  -> channel)
    PT     : (Cout, M)             f32   0/1 broadcast (channel -> lane)
    gamma  : (1, Cout)             f32
    beta   : (1, Cout)             f32
    Wts    : (Wf*Cfin, Wf)         bf16  width-folded 1x1 to_scores weight
    b_scores : (1, 1)              f32
    feat_out : (Nt, Ho, M)         f32
    scores   : (Nt, Hf, Wf)        f32
  """
  bf = jnp.bfloat16
  f32 = jnp.float32

  def kernel(*refs):
    x_ref = refs[0]
    pos = 1
    blk = []
    for _ in range(num_blocks):
      blk.append(refs[pos:pos + 5])
      pos += 5
    wts_ref = refs[pos]
    bsc_ref = refs[pos + 1]
    pos += 2
    feat_refs = refs[pos:pos + num_blocks]
    pos += num_blocks
    scores_ref = refs[pos]

    nt = feat_refs[0].shape[0]                     # samples per grid step
    # Activation as lane-dense rows with the batch folded into sublanes/M.
    a_bf = x_ref[...].reshape(nt * x_ref.shape[1], x_ref.shape[2])   # bf16
    a_f32 = None

    for i in range(num_blocks):
      w_ref, p_ref, pt_ref, g_ref, b_ref = blk[i]
      fr = feat_refs[i]                            # (Nt, Ho, M) output block
      stride = strides[i]
      ho, m = fr.shape[1], fr.shape[2]
      cout = p_ref.shape[1]
      rows = nt * ho
      inv_nsp = 1.0 / float(ho * (m // cout))      # 1 / (Ho*Wo)

      # ---- matmul LHS (bf16, batch*rows on sublanes), cast hoisted. ----
      if i == 0:
        # Wrapper pre-folds even|odd row pairs into lanes when strides[0]==2,
        # so block 0 needs no in-kernel fold in either case.
        lhs = a_bf
      elif stride == 2:
        kprev = a_f32.shape[1]
        ar = a_f32.reshape(rows, 2, kprev)         # split sublanes into pairs
        lhs = jnp.concatenate([ar[:, 0, :], ar[:, 1, :]], axis=1).astype(bf)
      else:
        lhs = a_f32.astype(bf)

      # ---- 3x3 conv: ONE bf16 MXU matmul, f32 accumulation. ----
      # The kw taps, W padding and W stride live inside the folded weights;
      # the kh taps are separated along the output lane dim and re-aligned
      # below with a sublane shift + per-sample boundary mask (H padding).
      y = jnp.dot(lhs, w_ref[...], preferred_element_type=f32)

      zrow = jnp.zeros((1, m), f32)
      hidx = jax.lax.broadcasted_iota(jnp.int32, (nt, ho, m), 1)

      c_mid = y[:, :m]                             # kh=1 (+ kh=2 for stride 2)
      c_top = y[:, m:2 * m]                        # kh=0 tap (input row above)
      c_top = jnp.concatenate([zrow, c_top[:rows - 1]], axis=0)
      acc3 = (c_mid.reshape(nt, ho, m)
              + jnp.where(hidx == 0, 0.0, c_top.reshape(nt, ho, m)))
      if stride == 1:
        c_bot = y[:, 2 * m:3 * m]                  # kh=2 tap (input row below)
        c_bot = jnp.concatenate([c_bot[1:], zrow], axis=0)
        acc3 = acc3 + jnp.where(hidx == ho - 1, 0.0,
                                c_bot.reshape(nt, ho, m))

      # ---- InstanceNorm (per-sample one-pass stats) + LeakyReLU, f32. ----
      s1 = jnp.sum(acc3, axis=1)                   # (Nt, M)
      s2 = jnp.sum(acc3 * acc3, axis=1)            # (Nt, M)
      pooled = jnp.dot(jnp.concatenate([s1, s2], axis=0), p_ref[...],
                       preferred_element_type=f32) * inv_nsp      # (2Nt, Cout)
      mean = pooled[:nt]
      var = jnp.maximum(pooled[nt:] - mean * mean, 0.0)           # one-pass
      inv = jax.lax.rsqrt(var + eps)
      scale = g_ref[...] * inv                     # (Nt, Cout)
      shift = b_ref[...] - mean * scale            # (Nt, Cout)
      sb = jnp.dot(jnp.concatenate([scale, shift], axis=0), pt_ref[...],
                   preferred_element_type=f32)                    # (2Nt, M)
      y3 = acc3 * sb[:nt][:, None, :] + sb[nt:][:, None, :]
      y3 = jnp.where(y3 >= 0.0, y3, slope * y3)    # LeakyReLU(0.2)

      fr[...] = y3                                 # single store per block
      a_f32 = y3.reshape(rows, m)                  # next layer's input (vregs)

    # ---- to_scores: 1x1 conv folded into a (Wf*Cfin, Wf) matmul. ----
    hf, wf = scores_ref.shape[1], scores_ref.shape[2]
    s = jnp.dot(a_f32.astype(bf), wts_ref[...], preferred_element_type=f32)
    scores_ref[...] = (s + bsc_ref[...]).reshape(nt, hf, wf)

  return kernel


# ----------------------------------------------------------------------------
# Module
# ----------------------------------------------------------------------------
class VectorDiscriminatorPallas:
  """Mirrors VectorDiscriminator channel bookkeeping; deterministic synthetic
  weights; forward (incl. layout glue) runs as one jitted fused Pallas call."""

  def __init__(self, num_channels, max_channels, num_blocks, input_channels,
               key):
    self.num_blocks = num_blocks
    self.in_channels = [min(num_channels * 2 ** (i - 1), max_channels)
                        for i in range(num_blocks)]
    self.in_channels[0] = input_channels
    self.out_channels = [min(num_channels * 2 ** i, max_channels)
                         for i in range(num_blocks)]
    self.strides = [2 if i < num_blocks - 1 else 1 for i in range(num_blocks)]

    keys = jax.random.split(key, num_blocks + 1)
    self._raw_blocks = []                # (w_hwio, gamma, beta, stride)
    for i in range(num_blocks):
      cin, cout = self.in_channels[i], self.out_channels[i]
      w = jax.random.normal(keys[i], (3, 3, cin, cout), jnp.float32)
      w = w * (1.0 / (9 * cin) ** 0.5)
      gamma = jnp.ones((cout,), jnp.float32)      # InstanceNorm affine (identity)
      beta = jnp.zeros((cout,), jnp.float32)
      self._raw_blocks.append((w, gamma, beta, self.strides[i]))

    kw_, kb_ = jax.random.split(keys[-1])
    cfin = self.out_channels[-1]
    self.w_scores = jax.random.normal(kw_, (cfin,), jnp.float32) * (1.0 / cfin ** 0.5)
    self.b_scores = jax.random.normal(kb_, (), jnp.float32) * 0.01

    self._cache = {}

  # -- host-side folding of conv weights into the lane-dense row formulation --
  def _build(self, n, h, w):
    ck = (n, h, w)
    if ck in self._cache:
      return self._cache[ck]

    nb = self.num_blocks
    nt = _pick_batch_tile(n)
    prefold = (self.strides[0] == 2)     # fold block-0 row pairs in the wrapper

    meta = []
    flat_params = []
    hi, wi = h, w
    for i, (wt, gamma, beta, stride) in enumerate(self._raw_blocks):
      cin, cout = self.in_channels[i], self.out_channels[i]
      ho = (hi - 1) // stride + 1
      wo = (wi - 1) // stride + 1
      if stride == 2:
        assert hi % 2 == 0 and wi % 2 == 0, "stride-2 blocks need even dims"

      wt_np = np.asarray(wt, np.float32)                 # (3, 3, cin, cout)
      m = wo * cout

      if stride == 2:
        # RHS (2*Wi*Cin, 2M): lanes [0:M] = kh=1 on even row + kh=2 on odd row
        # (same output row); lanes [M:2M] = kh=0 on the odd row of the row
        # pair ABOVE (re-aligned in-kernel by a +1 sublane shift).
        big = np.zeros((2 * wi * cin, 2 * m), np.float32)
        for owo in range(wo):
          oc = slice(owo * cout, (owo + 1) * cout)
          oc0 = slice(m + owo * cout, m + (owo + 1) * cout)
          for kw in range(3):
            iwi = 2 * owo + kw - 1                        # pad=1
            if not (0 <= iwi < wi):
              continue
            r_even = slice(iwi * cin, (iwi + 1) * cin)
            r_odd = slice(wi * cin + iwi * cin, wi * cin + (iwi + 1) * cin)
            big[r_even, oc] = wt_np[1, kw]
            big[r_odd, oc] = wt_np[2, kw]
            big[r_odd, oc0] = wt_np[0, kw]
      else:
        # RHS (Wi*Cin, 3M): lanes [0:M]=kh=1, [M:2M]=kh=0, [2M:3M]=kh=2.
        big = np.zeros((wi * cin, 3 * m), np.float32)
        for owo in range(wo):
          oc1 = slice(owo * cout, (owo + 1) * cout)
          oc0 = slice(m + owo * cout, m + (owo + 1) * cout)
          oc2 = slice(2 * m + owo * cout, 2 * m + (owo + 1) * cout)
          for kw in range(3):
            iwi = owo + kw - 1                            # pad=1
            if not (0 <= iwi < wi):
              continue
            r = slice(iwi * cin, (iwi + 1) * cin)
            big[r, oc1] = wt_np[1, kw]
            big[r, oc0] = wt_np[0, kw]
            big[r, oc2] = wt_np[2, kw]

      p = np.zeros((m, cout), np.float32)                 # lane -> channel
      p[np.arange(m), np.arange(m) % cout] = 1.0

      flat_params += [
          jnp.asarray(big, jnp.bfloat16),
          jnp.asarray(p),
          jnp.asarray(p.T.copy()),
          jnp.asarray(np.asarray(gamma, np.float32)[None, :]),
          jnp.asarray(np.asarray(beta, np.float32)[None, :]),
      ]
      meta.append((hi, wi, ho, wo, cin, cout, stride))
      hi, wi = ho, wo

    # to_scores: 1x1 conv folded into (Wf*Cfin, Wf) in the same row layout.
    cfin = self.out_channels[-1]
    hf, wf = hi, wi
    ws = np.asarray(self.w_scores, np.float32)
    wts = np.zeros((wf * cfin, wf), np.float32)
    for col in range(wf):
      wts[col * cfin:(col + 1) * cfin, col] = ws
    flat_params += [
        jnp.asarray(wts, jnp.bfloat16),
        jnp.asarray(self.b_scores, jnp.float32).reshape(1, 1),
    ]

    cin0 = self.in_channels[0]
    if prefold:
      x_full = (n, h // 2, 2 * w * cin0)
    else:
      x_full = (n, h, w * cin0)
    x_block = (nt,) + x_full[1:]

    in_specs = [pl.BlockSpec(x_block, lambda i: (i, 0, 0))]
    for arr in flat_params:
      in_specs.append(pl.BlockSpec(arr.shape, lambda i: (0, 0)))

    out_specs = []
    out_shape = []
    for (_, _, ho, wo, _, cout, _) in meta:
      out_specs.append(pl.BlockSpec((nt, ho, wo * cout), lambda i: (i, 0, 0)))
      out_shape.append(jax.ShapeDtypeStruct((n, ho, wo * cout), jnp.float32))
    out_specs.append(pl.BlockSpec((nt, hf, wf), lambda i: (i, 0, 0)))
    out_shape.append(jax.ShapeDtypeStruct((n, hf, wf), jnp.float32))

    kernel = _make_fused_kernel(nb, tuple(self.strides), EPS, LRELU_SLOPE)
    fwd = pl.pallas_call(
        kernel,
        out_shape=tuple(out_shape),
        grid=(n // nt,),
        in_specs=in_specs,
        out_specs=out_specs,
        compiler_params=pltpu.CompilerParams(
            dimension_semantics=("parallel",)),
        # NOTE: default scoped VMEM is plenty at these sizes; set
        # vmem_limit_bytes explicitly when running large spatial planes.
    )

    def _forward(x_nchw_in, *params):
      # All layout glue fused into the same XLA executable as the Pallas call.
      x2d = jnp.transpose(x_nchw_in, (0, 2, 3, 1)).reshape(x_full)
      x2d = x2d.astype(jnp.bfloat16)       # only feeds bf16 matmuls (lossless)
      outs = fwd(x2d, *params)
      feats = []
      for f, (_, _, ho, wo, _, cout, _) in zip(outs[:nb], meta):
        feats.append(jnp.transpose(f.reshape(n, ho, wo, cout), (0, 3, 1, 2)))
      scores = outs[nb][:, None, :, :]
      return scores, tuple(feats)

    entry = (jax.jit(_forward), flat_params)
    self._cache[ck] = entry
    return entry

  def __call__(self, x_nchw):
    n, c, h, w = x_nchw.shape
    assert c == self.in_channels[0]
    jit_fwd, flat_params = self._build(n, h, w)
    scores, feats = jit_fwd(x_nchw, *flat_params)
    return scores, list(feats)

  # -- pure-JAX reference (same bf16 operand quantization) for validation --
  def reference(self, x_nchw):
    x = jnp.transpose(x_nchw, (0, 2, 3, 1)).astype(jnp.float32)
    feats = []
    for (wt, gamma, beta, stride) in self._raw_blocks:
      xq = x.astype(jnp.bfloat16).astype(jnp.float32)
      wq = wt.astype(jnp.bfloat16).astype(jnp.float32)
      y = jax.lax.conv_general_dilated(
          xq, wq, window_strides=(stride, stride), padding=((1, 1), (1, 1)),
          dimension_numbers=("NHWC", "HWIO", "NHWC"),
          precision=jax.lax.Precision.HIGHEST)
      mean = jnp.mean(y, axis=(1, 2), keepdims=True)
      var = jnp.mean(jnp.square(y - mean), axis=(1, 2), keepdims=True)
      y = (y - mean) * jax.lax.rsqrt(var + EPS)
      y = y * gamma + beta
      y = jnp.where(y >= 0.0, y, LRELU_SLOPE * y)
      feats.append(jnp.transpose(y, (0, 3, 1, 2)))
      x = y
    xq = x.astype(jnp.bfloat16).astype(jnp.float32)
    wsq = self.w_scores.astype(jnp.bfloat16).astype(jnp.float32)
    s = jnp.einsum("nhwc,c->nhw", xq, wsq,
                   precision=jax.lax.Precision.HIGHEST) + self.b_scores
    return s[:, None, :, :], feats


# ----------------------------------------------------------------------------
if __name__ == "__main__":
  key = jax.random.PRNGKey(0)
  k_in, k_par = jax.random.split(key)

  # small config: num_channels=8, max_channels=32, num_blocks=3, input_channels=4
  N, C, H, W = 2, 4, 16, 16
  x = jax.random.normal(k_in, (N, C, H, W), jnp.float32)

  disc = VectorDiscriminatorPallas(num_channels=8, max_channels=32,
                                   num_blocks=3, input_channels=C, key=k_par)
  scores, features = disc(x)

  jax.block_until_ready(scores)
  for f in features:
    jax.block_until_ready(f)

  assert scores.shape == (2, 1, 4, 4), scores.shape
  assert [tuple(f.shape) for f in features] == [(2, 8, 8, 8), (2, 16, 4, 4),
                                                (2, 32, 4, 4)]
  assert bool(jnp.all(jnp.isfinite(scores)))

  # numerical check against the pure-JAX reference
  ref_scores, ref_feats = disc.reference(x)
  np.testing.assert_allclose(np.asarray(scores), np.asarray(ref_scores),
                             rtol=5e-2, atol=5e-2)
  for got, want in zip(features, ref_feats):
    np.testing.assert_allclose(np.asarray(got), np.asarray(want),
                               rtol=5e-2, atol=5e-2)

  print("KERNEL_OK")
</pallas_src>

<mosaic_0001>
module attributes {stable_mosaic.version = 11 : i64} {
  func.func @kernel(%arg0: i32, %arg1: memref<2x8x128xbf16, #tpu.memory_space<vmem>>, %arg2: memref<128x128xbf16, #tpu.memory_space<vmem>>, %arg3: memref<64x8xf32, #tpu.memory_space<vmem>>, %arg4: memref<8x64xf32, #tpu.memory_space<vmem>>, %arg5: memref<1x8xf32, #tpu.memory_space<vmem>>, %arg6: memref<1x8xf32, #tpu.memory_space<vmem>>, %arg7: memref<128x128xbf16, #tpu.memory_space<vmem>>, %arg8: memref<64x16xf32, #tpu.memory_space<vmem>>, %arg9: memref<16x64xf32, #tpu.memory_space<vmem>>, %arg10: memref<1x16xf32, #tpu.memory_space<vmem>>, %arg11: memref<1x16xf32, #tpu.memory_space<vmem>>, %arg12: memref<64x384xbf16, #tpu.memory_space<vmem>>, %arg13: memref<128x32xf32, #tpu.memory_space<vmem>>, %arg14: memref<32x128xf32, #tpu.memory_space<vmem>>, %arg15: memref<1x32xf32, #tpu.memory_space<vmem>>, %arg16: memref<1x32xf32, #tpu.memory_space<vmem>>, %arg17: memref<128x4xbf16, #tpu.memory_space<vmem>>, %arg18: memref<1x1xf32, #tpu.memory_space<vmem>>, %arg19: memref<2x8x64xf32, #tpu.memory_space<vmem>>, %arg20: memref<2x4x64xf32, #tpu.memory_space<vmem>>, %arg21: memref<2x4x128xf32, #tpu.memory_space<vmem>>, %arg22: memref<2x4x4xf32, #tpu.memory_space<vmem>>) attributes {dimension_semantics = [#tpu.dimension_semantics<parallel>], iteration_bounds = array<i64: 1>, scalar_prefetch = 0 : i64, scratch_operands = 0 : i64, tpu.core_type = #tpu.core_type<tc>, window_params = [{transform_indices = @transform_0, window_bounds = array<i64: 2, 8, 128>}, {pipeline_mode = #tpu.pipeline_mode<synchronous>, transform_indices = @transform_1, window_bounds = array<i64: 128, 128>}, {pipeline_mode = #tpu.pipeline_mode<synchronous>, transform_indices = @transform_2, window_bounds = array<i64: 64, 8>}, {pipeline_mode = #tpu.pipeline_mode<synchronous>, transform_indices = @transform_3, window_bounds = array<i64: 8, 64>}, {pipeline_mode = #tpu.pipeline_mode<synchronous>, transform_indices = @transform_4, window_bounds = array<i64: 1, 8>}, {pipeline_mode = #tpu.pipeline_mode<synchronous>, transform_indices = @transform_5, window_bounds = array<i64: 1, 8>}, {pipeline_mode = #tpu.pipeline_mode<synchronous>, transform_indices = @transform_6, window_bounds = array<i64: 128, 128>}, {pipeline_mode = #tpu.pipeline_mode<synchronous>, transform_indices = @transform_7, window_bounds = array<i64: 64, 16>}, {pipeline_mode = #tpu.pipeline_mode<synchronous>, transform_indices = @transform_8, window_bounds = array<i64: 16, 64>}, {pipeline_mode = #tpu.pipeline_mode<synchronous>, transform_indices = @transform_9, window_bounds = array<i64: 1, 16>}, {pipeline_mode = #tpu.pipeline_mode<synchronous>, transform_indices = @transform_10, window_bounds = array<i64: 1, 16>}, {pipeline_mode = #tpu.pipeline_mode<synchronous>, transform_indices = @transform_11, window_bounds = array<i64: 64, 384>}, {pipeline_mode = #tpu.pipeline_mode<synchronous>, transform_indices = @transform_12, window_bounds = array<i64: 128, 32>}, {pipeline_mode = #tpu.pipeline_mode<synchronous>, transform_indices = @transform_13, window_bounds = array<i64: 32, 128>}, {pipeline_mode = #tpu.pipeline_mode<synchronous>, transform_indices = @transform_14, window_bounds = array<i64: 1, 32>}, {pipeline_mode = #tpu.pipeline_mode<synchronous>, transform_indices = @transform_15, window_bounds = array<i64: 1, 32>}, {pipeline_mode = #tpu.pipeline_mode<synchronous>, transform_indices = @transform_16, window_bounds = array<i64: 128, 4>}, {pipeline_mode = #tpu.pipeline_mode<synchronous>, transform_indices = @transform_17, window_bounds = array<i64: 1, 1>}, {transform_indices = @transform_18, window_bounds = array<i64: 2, 8, 64>}, {transform_indices = @transform_19, window_bounds = array<i64: 2, 4, 64>}, {transform_indices = @transform_20, window_bounds = array<i64: 2, 4, 128>}, {transform_indices = @transform_21, window_bounds = array<i64: 2, 4, 4>}]} {
    %c0 = arith.constant 0 : index
    %c0_0 = arith.constant 0 : index
    %c0_1 = arith.constant 0 : index
    %0 = vector.load %arg1[%c0, %c0_0, %c0_1] : memref<2x8x128xbf16, #tpu.memory_space<vmem>>, vector<2x8x128xbf16>
    %1 = vector.shape_cast %0 : vector<2x8x128xbf16> to vector<16x128xbf16>
    %c0_2 = arith.constant 0 : index
    %c0_3 = arith.constant 0 : index
    %2 = vector.load %arg2[%c0_2, %c0_3] : memref<128x128xbf16, #tpu.memory_space<vmem>>, vector<128x128xbf16>
    %cst = arith.constant dense<0.000000e+00> : vector<16x128xf32>
    %3 = tpu.matmul %1, %2, %cst {dimension_numbers = #tpu.dot_dimension_numbers<[1], [0], [0], [1], [0, 0, 1, 1], [], []>} : vector<16x128xbf16>, vector<128x128xbf16>, vector<16x128xf32> -> vector<16x128xf32>
    %cst_4 = arith.constant 0.000000e+00 : f32
    %4 = vector.broadcast %cst_4 : f32 to vector<1x64xf32>
    %5 = tpu.iota {dimensions = array<i32: 1>} : vector<2x8x64xi32>
    %6 = vector.extract_strided_slice %3 {offsets = [0, 0], sizes = [16, 64], strides = [1, 1]} : vector<16x128xf32> to vector<16x64xf32>
    %7 = vector.extract_strided_slice %3 {offsets = [0, 64], sizes = [16, 64], strides = [1, 1]} : vector<16x128xf32> to vector<16x64xf32>
    %8 = vector.extract_strided_slice %7 {offsets = [0, 0], sizes = [15, 64], strides = [1, 1]} : vector<16x64xf32> to vector<15x64xf32>
    %9 = tpu.concatenate %4, %8 in 0 : vector<1x64xf32>, vector<15x64xf32> -> vector<16x64xf32>
    %10 = vector.shape_cast %6 : vector<16x64xf32> to vector<2x8x64xf32>
    %c0_i32 = arith.constant 0 : i32
    %11 = vector.broadcast %c0_i32 : i32 to vector<2x8x64xi32>
    %12 = arith.cmpi eq, %5, %11 : vector<2x8x64xi32>
    %13 = vector.shape_cast %9 : vector<16x64xf32> to vector<2x8x64xf32>
    %cst_5 = arith.constant 0.000000e+00 : f32
    %14 = vector.broadcast %cst_5 : f32 to vector<2x8x64xf32>
    %15 = arith.select %12, %14, %13 : vector<2x8x64xi1>, vector<2x8x64xf32>
    %16 = arith.addf %10, %15 : vector<2x8x64xf32>
    %cst_6 = arith.constant dense<0.000000e+00> : vector<2x64xf32>
    %17 = vector.multi_reduction <add>, %16, %cst_6 [1] : vector<2x8x64xf32> to vector<2x64xf32>
    %18 = arith.mulf %16, %16 : vector<2x8x64xf32>
    %cst_7 = arith.constant dense<0.000000e+00> : vector<2x64xf32>
    %19 = vector.multi_reduction <add>, %18, %cst_7 [1] : vector<2x8x64xf32> to vector<2x64xf32>
    %20 = tpu.concatenate %17, %19 in 0 : vector<2x64xf32>, vector<2x64xf32> -> vector<4x64xf32>
    %c0_8 = arith.constant 0 : index
    %c0_9 = arith.constant 0 : index
    %21 = vector.load %arg3[%c0_8, %c0_9] : memref<64x8xf32, #tpu.memory_space<vmem>>, vector<64x8xf32>
    %cst_10 = arith.constant dense<0.000000e+00> : vector<4x8xf32>
    %22 = tpu.matmul %20, %21, %cst_10 {dimension_numbers = #tpu.dot_dimension_numbers<[1], [0], [0], [1], [0, 0, 1, 1], [], []>} : vector<4x64xf32>, vector<64x8xf32>, vector<4x8xf32> -> vector<4x8xf32>
    %cst_11 = arith.constant 1.562500e-02 : f32
    %23 = vector.broadcast %cst_11 : f32 to vector<4x8xf32>
    %24 = arith.mulf %22, %23 : vector<4x8xf32>
    %25 = vector.extract_strided_slice %24 {offsets = [0, 0], sizes = [2, 8], strides = [1, 1]} : vector<4x8xf32> to vector<2x8xf32>
    %26 = vector.extract_strided_slice %24 {offsets = [2, 0], sizes = [2, 8], strides = [1, 1]} : vector<4x8xf32> to vector<2x8xf32>
    %27 = arith.mulf %25, %25 : vector<2x8xf32>
    %28 = arith.subf %26, %27 : vector<2x8xf32>
    %cst_12 = arith.constant 0.000000e+00 : f32
    %29 = vector.broadcast %cst_12 : f32 to vector<2x8xf32>
    %30 = arith.maximumf %28, %29 : vector<2x8xf32>
    %cst_13 = arith.constant 9.99999974E-6 : f32
    %31 = vector.broadcast %cst_13 : f32 to vector<2x8xf32>
    %32 = arith.addf %30, %31 : vector<2x8xf32>
    %33 = math.rsqrt %32 : vector<2x8xf32>
    %c0_14 = arith.constant 0 : index
    %c0_15 = arith.constant 0 : index
    %34 = vector.load %arg5[%c0_14, %c0_15] : memref<1x8xf32, #tpu.memory_space<vmem>>, vector<1x8xf32>
    %35 = vector.broadcast %34 : vector<1x8xf32> to vector<2x8xf32>
    %36 = arith.mulf %35, %33 : vector<2x8xf32>
    %c0_16 = arith.constant 0 : index
    %c0_17 = arith.constant 0 : index
    %37 = vector.load %arg6[%c0_16, %c0_17] : memref<1x8xf32, #tpu.memory_space<vmem>>, vector<1x8xf32>
    %38 = arith.mulf %25, %36 : vector<2x8xf32>
    %39 = vector.broadcast %37 : vector<1x8xf32> to vector<2x8xf32>
    %40 = arith.subf %39, %38 : vector<2x8xf32>
    %41 = tpu.concatenate %36, %40 in 0 : vector<2x8xf32>, vector<2x8xf32> -> vector<4x8xf32>
    %c0_18 = arith.constant 0 : index
    %c0_19 = arith.constant 0 : index
    %42 = vector.load %arg4[%c0_18, %c0_19] : memref<8x64xf32, #tpu.memory_space<vmem>>, vector<8x64xf32>
    %cst_20 = arith.constant dense<0.000000e+00> : vector<4x64xf32>
    %43 = tpu.matmul %41, %42, %cst_20 {dimension_numbers = #tpu.dot_dimension_numbers<[1], [0], [0], [1], [0, 0, 1, 1], [], []>} : vector<4x8xf32>, vector<8x64xf32>, vector<4x64xf32> -> vector<4x64xf32>
    %44 = vector.extract_strided_slice %43 {offsets = [0, 0], sizes = [2, 64], strides = [1, 1]} : vector<4x64xf32> to vector<2x64xf32>
    %45 = vector.shape_cast %44 : vector<2x64xf32> to vector<2x1x64xf32>
    %46 = vector.broadcast %45 : vector<2x1x64xf32> to vector<2x8x64xf32>
    %47 = arith.mulf %16, %46 : vector<2x8x64xf32>
    %48 = vector.extract_strided_slice %43 {offsets = [2, 0], sizes = [2, 64], strides = [1, 1]} : vector<4x64xf32> to vector<2x64xf32>
    %49 = vector.shape_cast %48 : vector<2x64xf32> to vector<2x1x64xf32>
    %50 = vector.broadcast %49 : vector<2x1x64xf32> to vector<2x8x64xf32>
    %51 = arith.addf %47, %50 : vector<2x8x64xf32>
    %cst_21 = arith.constant 0.000000e+00 : f32
    %52 = vector.broadcast %cst_21 : f32 to vector<2x8x64xf32>
    %53 = arith.cmpf oge, %51, %52 : vector<2x8x64xf32>
    %cst_22 = arith.constant 2.000000e-01 : f32
    %54 = vector.broadcast %cst_22 : f32 to vector<2x8x64xf32>
    %55 = arith.mulf %54, %51 : vector<2x8x64xf32>
    %56 = arith.select %53, %51, %55 : vector<2x8x64xi1>, vector<2x8x64xf32>
    %c0_23 = arith.constant 0 : index
    %c0_24 = arith.constant 0 : index
    %c0_25 = arith.constant 0 : index
    %57 = vector.load %arg19[%c0_23, %c0_24, %c0_25] : memref<2x8x64xf32, #tpu.memory_space<vmem>>, vector<2x8x64xf32>
    tpu.vector_store %arg19[%c0_23, %c0_24, %c0_25], %56 {strides = array<i32>} : memref<2x8x64xf32, #tpu.memory_space<vmem>>, vector<2x8x64xf32>,
    %58 = vector.shape_cast %56 : vector<2x8x64xf32> to vector<16x64xf32>
    %59 = vector.shape_cast %58 : vector<16x64xf32> to vector<8x2x64xf32>
    %60 = vector.extract_strided_slice %59 {offsets = [0, 0, 0], sizes = [8, 1, 64], strides = [1, 1, 1]} : vector<8x2x64xf32> to vector<8x1x64xf32>
    %61 = vector.shape_cast %60 : vector<8x1x64xf32> to vector<8x64xf32>
    %62 = vector.extract_strided_slice %59 {offsets = [0, 1, 0], sizes = [8, 1, 64], strides = [1, 1, 1]} : vector<8x2x64xf32> to vector<8x1x64xf32>
    %63 = vector.shape_cast %62 : vector<8x1x64xf32> to vector<8x64xf32>
    %64 = tpu.concatenate %61, %63 in 1 : vector<8x64xf32>, vector<8x64xf32> -> vector<8x128xf32>
    %65 = arith.truncf %64 : vector<8x128xf32> to vector<8x128xbf16>
    %c0_26 = arith.constant 0 : index
    %c0_27 = arith.constant 0 : index
    %66 = vector.load %arg7[%c0_26, %c0_27] : memref<128x128xbf16, #tpu.memory_space<vmem>>, vector<128x128xbf16>
    %cst_28 = arith.constant dense<0.000000e+00> : vector<8x128xf32>
    %67 = tpu.matmul %65, %66, %cst_28 {dimension_numbers = #tpu.dot_dimension_numbers<[1], [0], [0], [1], [0, 0, 1, 1], [], []>} : vector<8x128xbf16>, vector<128x128xbf16>, vector<8x128xf32> -> vector<8x128xf32>
    %cst_29 = arith.constant 0.000000e+00 : f32
    %68 = vector.broadcast %cst_29 : f32 to vector<1x64xf32>
    %69 = tpu.iota {dimensions = array<i32: 1>} : vector<2x4x64xi32>
    %70 = vector.extract_strided_slice %67 {offsets = [0, 0], sizes = [8, 64], strides = [1, 1]} : vector<8x128xf32> to vector<8x64xf32>
    %71 = vector.extract_strided_slice %67 {offsets = [0, 64], sizes = [8, 64], strides = [1, 1]} : vector<8x128xf32> to vector<8x64xf32>
    %72 = vector.extract_strided_slice %71 {offsets = [0, 0], sizes = [7, 64], strides = [1, 1]} : vector<8x64xf32> to vector<7x64xf32>
    %73 = tpu.concatenate %68, %72 in 0 : vector<1x64xf32>, vector<7x64xf32> -> vector<8x64xf32>
    %74 = vector.shape_cast %70 : vector<8x64xf32> to vector<2x4x64xf32>
    %c0_i32_30 = arith.constant 0 : i32
    %75 = vector.broadcast %c0_i32_30 : i32 to vector<2x4x64xi32>
    %76 = arith.cmpi eq, %69, %75 : vector<2x4x64xi32>
    %77 = vector.shape_cast %73 : vector<8x64xf32> to vector<2x4x64xf32>
    %cst_31 = arith.constant 0.000000e+00 : f32
    %78 = vector.broadcast %cst_31 : f32 to vector<2x4x64xf32>
    %79 = arith.select %76, %78, %77 : vector<2x4x64xi1>, vector<2x4x64xf32>
    %80 = arith.addf %74, %79 : vector<2x4x64xf32>
    %cst_32 = arith.constant dense<0.000000e+00> : vector<2x64xf32>
    %81 = vector.multi_reduction <add>, %80, %cst_32 [1] : vector<2x4x64xf32> to vector<2x64xf32>
    %82 = arith.mulf %80, %80 : vector<2x4x64xf32>
    %cst_33 = arith.constant dense<0.000000e+00> : vector<2x64xf32>
    %83 = vector.multi_reduction <add>, %82, %cst_33 [1] : vector<2x4x64xf32> to vector<2x64xf32>
    %84 = tpu.concatenate %81, %83 in 0 : vector<2x64xf32>, vector<2x64xf32> -> vector<4x64xf32>
    %c0_34 = arith.constant 0 : index
    %c0_35 = arith.constant 0 : index
    %85 = vector.load %arg8[%c0_34, %c0_35] : memref<64x16xf32, #tpu.memory_space<vmem>>, vector<64x16xf32>
    %cst_36 = arith.constant dense<0.000000e+00> : vector<4x16xf32>
    %86 = tpu.matmul %84, %85, %cst_36 {dimension_numbers = #tpu.dot_dimension_numbers<[1], [0], [0], [1], [0, 0, 1, 1], [], []>} : vector<4x64xf32>, vector<64x16xf32>, vector<4x16xf32> -> vector<4x16xf32>
    %cst_37 = arith.constant 6.250000e-02 : f32
    %87 = vector.broadcast %cst_37 : f32 to vector<4x16xf32>
    %88 = arith.mulf %86, %87 : vector<4x16xf32>
    %89 = vector.extract_strided_slice %88 {offsets = [0, 0], sizes = [2, 16], strides = [1, 1]} : vector<4x16xf32> to vector<2x16xf32>
    %90 = vector.extract_strided_slice %88 {offsets = [2, 0], sizes = [2, 16], strides = [1, 1]} : vector<4x16xf32> to vector<2x16xf32>
    %91 = arith.mulf %89, %89 : vector<2x16xf32>
    %92 = arith.subf %90, %91 : vector<2x16xf32>
    %cst_38 = arith.constant 0.000000e+00 : f32
    %93 = vector.broadcast %cst_38 : f32 to vector<2x16xf32>
    %94 = arith.maximumf %92, %93 : vector<2x16xf32>
    %cst_39 = arith.constant 9.99999974E-6 : f32
    %95 = vector.broadcast %cst_39 : f32 to vector<2x16xf32>
    %96 = arith.addf %94, %95 : vector<2x16xf32>
    %97 = math.rsqrt %96 : vector<2x16xf32>
    %c0_40 = arith.constant 0 : index
    %c0_41 = arith.constant 0 : index
    %98 = vector.load %arg10[%c0_40, %c0_41] : memref<1x16xf32, #tpu.memory_space<vmem>>, vector<1x16xf32>
    %99 = vector.broadcast %98 : vector<1x16xf32> to vector<2x16xf32>
    %100 = arith.mulf %99, %97 : vector<2x16xf32>
    %c0_42 = arith.constant 0 : index
    %c0_43 = arith.constant 0 : index
    %101 = vector.load %arg11[%c0_42, %c0_43] : memref<1x16xf32, #tpu.memory_space<vmem>>, vector<1x16xf32>
    %102 = arith.mulf %89, %100 : vector<2x16xf32>
    %103 = vector.broadcast %101 : vector<1x16xf32> to vector<2x16xf32>
    %104 = arith.subf %103, %102 : vector<2x16xf32>
    %105 = tpu.concatenate %100, %104 in 0 : vector<2x16xf32>, vector<2x16xf32> -> vector<4x16xf32>
    %c0_44 = arith.constant 0 : index
    %c0_45 = arith.constant 0 : index
    %106 = vector.load %arg9[%c0_44, %c0_45] : memref<16x64xf32, #tpu.memory_space<vmem>>, vector<16x64xf32>
    %cst_46 = arith.constant dense<0.000000e+00> : vector<4x64xf32>
    %107 = tpu.matmul %105, %106, %cst_46 {dimension_numbers = #tpu.dot_dimension_numbers<[1], [0], [0], [1], [0, 0, 1, 1], [], []>} : vector<4x16xf32>, vector<16x64xf32>, vector<4x64xf32> -> vector<4x64xf32>
    %108 = vector.extract_strided_slice %107 {offsets = [0, 0], sizes = [2, 64], strides = [1, 1]} : vector<4x64xf32> to vector<2x64xf32>
    %109 = vector.shape_cast %108 : vector<2x64xf32> to vector<2x1x64xf32>
    %110 = vector.broadcast %109 : vector<2x1x64xf32> to vector<2x4x64xf32>
    %111 = arith.mulf %80, %110 : vector<2x4x64xf32>
    %112 = vector.extract_strided_slice %107 {offsets = [2, 0], sizes = [2, 64], strides = [1, 1]} : vector<4x64xf32> to vector<2x64xf32>
    %113 = vector.shape_cast %112 : vector<2x64xf32> to vector<2x1x64xf32>
    %114 = vector.broadcast %113 : vector<2x1x64xf32> to vector<2x4x64xf32>
    %115 = arith.addf %111, %114 : vector<2x4x64xf32>
    %cst_47 = arith.constant 0.000000e+00 : f32
    %116 = vector.broadcast %cst_47 : f32 to vector<2x4x64xf32>
    %117 = arith.cmpf oge, %115, %116 : vector<2x4x64xf32>
    %cst_48 = arith.constant 2.000000e-01 : f32
    %118 = vector.broadcast %cst_48 : f32 to vector<2x4x64xf32>
    %119 = arith.mulf %118, %115 : vector<2x4x64xf32>
    %120 = arith.select %117, %115, %119 : vector<2x4x64xi1>, vector<2x4x64xf32>
    %c0_49 = arith.constant 0 : index
    %c0_50 = arith.constant 0 : index
    %c0_51 = arith.constant 0 : index
    %121 = vector.load %arg20[%c0_49, %c0_50, %c0_51] : memref<2x4x64xf32, #tpu.memory_space<vmem>>, vector<2x4x64xf32>
    tpu.vector_store %arg20[%c0_49, %c0_50, %c0_51], %120 {strides = array<i32>} : memref<2x4x64xf32, #tpu.memory_space<vmem>>, vector<2x4x64xf32>,
    %122 = vector.shape_cast %120 : vector<2x4x64xf32> to vector<8x64xf32>
    %123 = arith.truncf %122 : vector<8x64xf32> to vector<8x64xbf16>
    %c0_52 = arith.constant 0 : index
    %c0_53 = arith.constant 0 : index
    %124 = vector.load %arg12[%c0_52, %c0_53] : memref<64x384xbf16, #tpu.memory_space<vmem>>, vector<64x384xbf16>
    %cst_54 = arith.constant dense<0.000000e+00> : vector<8x384xf32>
    %125 = tpu.matmul %123, %124, %cst_54 {dimension_numbers = #tpu.dot_dimension_numbers<[1], [0], [0], [1], [0, 0, 1, 1], [], []>} : vector<8x64xbf16>, vector<64x384xbf16>, vector<8x384xf32> -> vector<8x384xf32>
    %cst_55 = arith.constant 0.000000e+00 : f32
    %126 = vector.broadcast %cst_55 : f32 to vector<1x128xf32>
    %127 = tpu.iota {dimensions = array<i32: 1>} : vector<2x4x128xi32>
    %128 = vector.extract_strided_slice %125 {offsets = [0, 0], sizes = [8, 128], strides = [1, 1]} : vector<8x384xf32> to vector<8x128xf32>
    %129 = vector.extract_strided_slice %125 {offsets = [0, 128], sizes = [8, 128], strides = [1, 1]} : vector<8x384xf32> to vector<8x128xf32>
    %130 = vector.extract_strided_slice %129 {offsets = [0, 0], sizes = [7, 128], strides = [1, 1]} : vector<8x128xf32> to vector<7x128xf32>
    %131 = tpu.concatenate %126, %130 in 0 : vector<1x128xf32>, vector<7x128xf32> -> vector<8x128xf32>
    %132 = vector.shape_cast %128 : vector<8x128xf32> to vector<2x4x128xf32>
    %c0_i32_56 = arith.constant 0 : i32
    %133 = vector.broadcast %c0_i32_56 : i32 to vector<2x4x128xi32>
    %134 = arith.cmpi eq, %127, %133 : vector<2x4x128xi32>
    %135 = vector.shape_cast %131 : vector<8x128xf32> to vector<2x4x128xf32>
    %cst_57 = arith.constant 0.000000e+00 : f32
    %136 = vector.broadcast %cst_57 : f32 to vector<2x4x128xf32>
    %137 = arith.select %134, %136, %135 : vector<2x4x128xi1>, vector<2x4x128xf32>
    %138 = arith.addf %132, %137 : vector<2x4x128xf32>
    %139 = vector.extract_strided_slice %125 {offsets = [0, 256], sizes = [8, 128], strides = [1, 1]} : vector<8x384xf32> to vector<8x128xf32>
    %140 = vector.extract_strided_slice %139 {offsets = [1, 0], sizes = [7, 128], strides = [1, 1]} : vector<8x128xf32> to vector<7x128xf32>
    %141 = tpu.concatenate %140, %126 in 0 : vector<7x128xf32>, vector<1x128xf32> -> vector<8x128xf32>
    %c3_i32 = arith.constant 3 : i32
    %142 = vector.broadcast %c3_i32 : i32 to vector<2x4x128xi32>
    %143 = arith.cmpi eq, %127, %142 : vector<2x4x128xi32>
    %144 = vector.shape_cast %141 : vector<8x128xf32> to vector<2x4x128xf32>
    %cst_58 = arith.constant 0.000000e+00 : f32
    %145 = vector.broadcast %cst_58 : f32 to vector<2x4x128xf32>
    %146 = arith.select %143, %145, %144 : vector<2x4x128xi1>, vector<2x4x128xf32>
    %147 = arith.addf %138, %146 : vector<2x4x128xf32>
    %cst_59 = arith.constant dense<0.000000e+00> : vector<2x128xf32>
    %148 = vector.multi_reduction <add>, %147, %cst_59 [1] : vector<2x4x128xf32> to vector<2x128xf32>
    %149 = arith.mulf %147, %147 : vector<2x4x128xf32>
    %cst_60 = arith.constant dense<0.000000e+00> : vector<2x128xf32>
    %150 = vector.multi_reduction <add>, %149, %cst_60 [1] : vector<2x4x128xf32> to vector<2x128xf32>
    %151 = tpu.concatenate %148, %150 in 0 : vector<2x128xf32>, vector<2x128xf32> -> vector<4x128xf32>
    %c0_61 = arith.constant 0 : index
    %c0_62 = arith.constant 0 : index
    %152 = vector.load %arg13[%c0_61, %c0_62] : memref<128x32xf32, #tpu.memory_space<vmem>>, vector<128x32xf32>
    %cst_63 = arith.constant dense<0.000000e+00> : vector<4x32xf32>
    %153 = tpu.matmul %151, %152, %cst_63 {dimension_numbers = #tpu.dot_dimension_numbers<[1], [0], [0], [1], [0, 0, 1, 1], [], []>} : vector<4x128xf32>, vector<128x32xf32>, vector<4x32xf32> -> vector<4x32xf32>
    %cst_64 = arith.constant 6.250000e-02 : f32
    %154 = vector.broadcast %cst_64 : f32 to vector<4x32xf32>
    %155 = arith.mulf %153, %154 : vector<4x32xf32>
    %156 = vector.extract_strided_slice %155 {offsets = [0, 0], sizes = [2, 32], strides = [1, 1]} : vector<4x32xf32> to vector<2x32xf32>
    %157 = vector.extract_strided_slice %155 {offsets = [2, 0], sizes = [2, 32], strides = [1, 1]} : vector<4x32xf32> to vector<2x32xf32>
    %158 = arith.mulf %156, %156 : vector<2x32xf32>
    %159 = arith.subf %157, %158 : vector<2x32xf32>
    %cst_65 = arith.constant 0.000000e+00 : f32
    %160 = vector.broadcast %cst_65 : f32 to vector<2x32xf32>
    %161 = arith.maximumf %159, %160 : vector<2x32xf32>
    %cst_66 = arith.constant 9.99999974E-6 : f32
    %162 = vector.broadcast %cst_66 : f32 to vector<2x32xf32>
    %163 = arith.addf %161, %162 : vector<2x32xf32>
    %164 = math.rsqrt %163 : vector<2x32xf32>
    %c0_67 = arith.constant 0 : index
    %c0_68 = arith.constant 0 : index
    %165 = vector.load %arg15[%c0_67, %c0_68] : memref<1x32xf32, #tpu.memory_space<vmem>>, vector<1x32xf32>
    %166 = vector.broadcast %165 : vector<1x32xf32> to vector<2x32xf32>
    %167 = arith.mulf %166, %164 : vector<2x32xf32>
    %c0_69 = arith.constant 0 : index
    %c0_70 = arith.constant 0 : index
    %168 = vector.load %arg16[%c0_69, %c0_70] : memref<1x32xf32, #tpu.memory_space<vmem>>, vector<1x32xf32>
    %169 = arith.mulf %156, %167 : vector<2x32xf32>
    %170 = vector.broadcast %168 : vector<1x32xf32> to vector<2x32xf32>
    %171 = arith.subf %170, %169 : vector<2x32xf32>
    %172 = tpu.concatenate %167, %171 in 0 : vector<2x32xf32>, vector<2x32xf32> -> vector<4x32xf32>
    %c0_71 = arith.constant 0 : index
    %c0_72 = arith.constant 0 : index
    %173 = vector.load %arg14[%c0_71, %c0_72] : memref<32x128xf32, #tpu.memory_space<vmem>>, vector<32x128xf32>
    %cst_73 = arith.constant dense<0.000000e+00> : vector<4x128xf32>
    %174 = tpu.matmul %172, %173, %cst_73 {dimension_numbers = #tpu.dot_dimension_numbers<[1], [0], [0], [1], [0, 0, 1, 1], [], []>} : vector<4x32xf32>, vector<32x128xf32>, vector<4x128xf32> -> vector<4x128xf32>
    %175 = vector.extract_strided_slice %174 {offsets = [0, 0], sizes = [2, 128], strides = [1, 1]} : vector<4x128xf32> to vector<2x128xf32>
    %176 = vector.shape_cast %175 : vector<2x128xf32> to vector<2x1x128xf32>
    %177 = vector.broadcast %176 : vector<2x1x128xf32> to vector<2x4x128xf32>
    %178 = arith.mulf %147, %177 : vector<2x4x128xf32>
    %179 = vector.extract_strided_slice %174 {offsets = [2, 0], sizes = [2, 128], strides = [1, 1]} : vector<4x128xf32> to vector<2x128xf32>
    %180 = vector.shape_cast %179 : vector<2x128xf32> to vector<2x1x128xf32>
    %181 = vector.broadcast %180 : vector<2x1x128xf32> to vector<2x4x128xf32>
    %182 = arith.addf %178, %181 : vector<2x4x128xf32>
    %cst_74 = arith.constant 0.000000e+00 : f32
    %183 = vector.broadcast %cst_74 : f32 to vector<2x4x128xf32>
    %184 = arith.cmpf oge, %182, %183 : vector<2x4x128xf32>
    %cst_75 = arith.constant 2.000000e-01 : f32
    %185 = vector.broadcast %cst_75 : f32 to vector<2x4x128xf32>
    %186 = arith.mulf %185, %182 : vector<2x4x128xf32>
    %187 = arith.select %184, %182, %186 : vector<2x4x128xi1>, vector<2x4x128xf32>
    %c0_76 = arith.constant 0 : index
    %c0_77 = arith.constant 0 : index
    %c0_78 = arith.constant 0 : index
    %188 = vector.load %arg21[%c0_76, %c0_77, %c0_78] : memref<2x4x128xf32, #tpu.memory_space<vmem>>, vector<2x4x128xf32>
    tpu.vector_store %arg21[%c0_76, %c0_77, %c0_78], %187 {strides = array<i32>} : memref<2x4x128xf32, #tpu.memory_space<vmem>>, vector<2x4x128xf32>,
    %189 = vector.shape_cast %187 : vector<2x4x128xf32> to vector<8x128xf32>
    %190 = arith.truncf %189 : vector<8x128xf32> to vector<8x128xbf16>
    %c0_79 = arith.constant 0 : index
    %c0_80 = arith.constant 0 : index
    %191 = vector.load %arg17[%c0_79, %c0_80] : memref<128x4xbf16, #tpu.memory_space<vmem>>, vector<128x4xbf16>
    %cst_81 = arith.constant dense<0.000000e+00> : vector<8x4xf32>
    %192 = tpu.matmul %190, %191, %cst_81 {dimension_numbers = #tpu.dot_dimension_numbers<[1], [0], [0], [1], [0, 0, 1, 1], [], []>} : vector<8x128xbf16>, vector<128x4xbf16>, vector<8x4xf32> -> vector<8x4xf32>
    %c0_82 = arith.constant 0 : index
    %c0_83 = arith.constant 0 : index
    %193 = vector.load %arg18[%c0_82, %c0_83] : memref<1x1xf32, #tpu.memory_space<vmem>>, vector<1x1xf32>
    %194 = vector.broadcast %193 : vector<1x1xf32> to vector<8x4xf32>
    %195 = arith.addf %192, %194 : vector<8x4xf32>
    %196 = vector.shape_cast %195 : vector<8x4xf32> to vector<2x4x4xf32>
    %c0_84 = arith.constant 0 : index
    %c0_85 = arith.constant 0 : index
    %c0_86 = arith.constant 0 : index
    %197 = vector.load %arg22[%c0_84, %c0_85, %c0_86] : memref<2x4x4xf32, #tpu.memory_space<vmem>>, vector<2x4x4xf32>
    tpu.vector_store %arg22[%c0_84, %c0_85, %c0_86], %196 {strides = array<i32>} : memref<2x4x4xf32, #tpu.memory_space<vmem>>, vector<2x4x4xf32>,
    return
  }
  func.func @transform_0(%arg0: i32) -> (i32, i32, i32) {
    %c0_i32 = arith.constant 0 : i32
    %c0_i32_0 = arith.constant 0 : i32
    %c0_i32_1 = arith.constant 0 : i32
    return %arg0, %c0_i32, %c0_i32_0 : i32, i32, i32
  }
  func.func @transform_1(%arg0: i32) -> (i32, i32) {
    %c0_i32 = arith.constant 0 : i32
    %c0_i32_0 = arith.constant 0 : i32
    %c0_i32_1 = arith.constant 0 : i32
    return %c0_i32, %c0_i32_0 : i32, i32
  }
  func.func @transform_2(%arg0: i32) -> (i32, i32) {
    %c0_i32 = arith.constant 0 : i32
    %c0_i32_0 = arith.constant 0 : i32
    %c0_i32_1 = arith.constant 0 : i32
    return %c0_i32, %c0_i32_0 : i32, i32
  }
  func.func @transform_3(%arg0: i32) -> (i32, i32) {
    %c0_i32 = arith.constant 0 : i32
    %c0_i32_0 = arith.constant 0 : i32
    %c0_i32_1 = arith.constant 0 : i32
    return %c0_i32, %c0_i32_0 : i32, i32
  }
  func.func @transform_4(%arg0: i32) -> (i32, i32) {
    %c0_i32 = arith.constant 0 : i32
    %c0_i32_0 = arith.constant 0 : i32
    %c0_i32_1 = arith.constant 0 : i32
    return %c0_i32, %c0_i32_0 : i32, i32
  }
  func.func @transform_5(%arg0: i32) -> (i32, i32) {
    %c0_i32 = arith.constant 0 : i32
    %c0_i32_0 = arith.constant 0 : i32
    %c0_i32_1 = arith.constant 0 : i32
    return %c0_i32, %c0_i32_0 : i32, i32
  }
  func.func @transform_6(%arg0: i32) -> (i32, i32) {
    %c0_i32 = arith.constant 0 : i32
    %c0_i32_0 = arith.constant 0 : i32
    %c0_i32_1 = arith.constant 0 : i32
    return %c0_i32, %c0_i32_0 : i32, i32
  }
  func.func @transform_7(%arg0: i32) -> (i32, i32) {
    %c0_i32 = arith.constant 0 : i32
    %c0_i32_0 = arith.constant 0 : i32
    %c0_i32_1 = arith.constant 0 : i32
    return %c0_i32, %c0_i32_0 : i32, i32
  }
  func.func @transform_8(%arg0: i32) -> (i32, i32) {
    %c0_i32 = arith.constant 0 : i32
    %c0_i32_0 = arith.constant 0 : i32
    %c0_i32_1 = arith.constant 0 : i32
    return %c0_i32, %c0_i32_0 : i32, i32
  }
  func.func @transform_9(%arg0: i32) -> (i32, i32) {
    %c0_i32 = arith.constant 0 : i32
    %c0_i32_0 = arith.constant 0 : i32
    %c0_i32_1 = arith.constant 0 : i32
    return %c0_i32, %c0_i32_0 : i32, i32
  }
  func.func @transform_10(%arg0: i32) -> (i32, i32) {
    %c0_i32 = arith.constant 0 : i32
    %c0_i32_0 = arith.constant 0 : i32
    %c0_i32_1 = arith.constant 0 : i32
    return %c0_i32, %c0_i32_0 : i32, i32
  }
  func.func @transform_11(%arg0: i32) -> (i32, i32) {
    %c0_i32 = arith.constant 0 : i32
    %c0_i32_0 = arith.constant 0 : i32
    %c0_i32_1 = arith.constant 0 : i32
    return %c0_i32, %c0_i32_0 : i32, i32
  }
  func.func @transform_12(%arg0: i32) -> (i32, i32) {
    %c0_i32 = arith.constant 0 : i32
    %c0_i32_0 = arith.constant 0 : i32
    %c0_i32_1 = arith.constant 0 : i32
    return %c0_i32, %c0_i32_0 : i32, i32
  }
  func.func @transform_13(%arg0: i32) -> (i32, i32) {
    %c0_i32 = arith.constant 0 : i32
    %c0_i32_0 = arith.constant 0 : i32
    %c0_i32_1 = arith.constant 0 : i32
    return %c0_i32, %c0_i32_0 : i32, i32
  }
  func.func @transform_14(%arg0: i32) -> (i32, i32) {
    %c0_i32 = arith.constant 0 : i32
    %c0_i32_0 = arith.constant 0 : i32
    %c0_i32_1 = arith.constant 0 : i32
    return %c0_i32, %c0_i32_0 : i32, i32
  }
  func.func @transform_15(%arg0: i32) -> (i32, i32) {
    %c0_i32 = arith.constant 0 : i32
    %c0_i32_0 = arith.constant 0 : i32
    %c0_i32_1 = arith.constant 0 : i32
    return %c0_i32, %c0_i32_0 : i32, i32
  }
  func.func @transform_16(%arg0: i32) -> (i32, i32) {
    %c0_i32 = arith.constant 0 : i32
    %c0_i32_0 = arith.constant 0 : i32
    %c0_i32_1 = arith.constant 0 : i32
    return %c0_i32, %c0_i32_0 : i32, i32
  }
  func.func @transform_17(%arg0: i32) -> (i32, i32) {
    %c0_i32 = arith.constant 0 : i32
    %c0_i32_0 = arith.constant 0 : i32
    %c0_i32_1 = arith.constant 0 : i32
    return %c0_i32, %c0_i32_0 : i32, i32
  }
  func.func @transform_18(%arg0: i32) -> (i32, i32, i32) {
    %c0_i32 = arith.constant 0 : i32
    %c0_i32_0 = arith.constant 0 : i32
    %c0_i32_1 = arith.constant 0 : i32
    return %arg0, %c0_i32, %c0_i32_0 : i32, i32, i32
  }
  func.func @transform_19(%arg0: i32) -> (i32, i32, i32) {
    %c0_i32 = arith.constant 0 : i32
    %c0_i32_0 = arith.constant 0 : i32
    %c0_i32_1 = arith.constant 0 : i32
    return %arg0, %c0_i32, %c0_i32_0 : i32, i32, i32
  }
  func.func @transform_20(%arg0: i32) -> (i32, i32, i32) {
    %c0_i32 = arith.constant 0 : i32
    %c0_i32_0 = arith.constant 0 : i32
    %c0_i32_1 = arith.constant 0 : i32
    return %arg0, %c0_i32, %c0_i32_0 : i32, i32, i32
  }
  func.func @transform_21(%arg0: i32) -> (i32, i32, i32) {
    %c0_i32 = arith.constant 0 : i32
    %c0_i32_0 = arith.constant 0 : i32
    %c0_i32_1 = arith.constant 0 : i32
    return %arg0, %c0_i32, %c0_i32_0 : i32, i32, i32
  }
}

</mosaic_0001>

<bundles_post_ra>
// kernel: _forward.1
= control target key start
LH: loop header
LB: loop body
LE: loop exit
PB: predicated region body
PF: predicated region fallthrough
CT: control target
= control target key end

     0   :  { %s2705_s0 = inlined_call_operand.vmem [shape: bf16[2,8,128], index: 0, kind: input, shape index: {}]   ;;  %s2706_s1 = inlined_call_operand.vmem [shape: bf16[128,128], index: 1, kind: input, shape index: {}]   ;;  %s2707_s2 = inlined_call_operand.vmem [shape: f32[64,8], index: 2, kind: input, shape index: {}]   ;;  %s2708_s3 = inlined_call_operand.vmem [shape: f32[8,64], index: 3, kind: input, shape index: {}]   ;;  %s2709_s4 = inlined_call_operand.vmem [shape: f32[1,8], index: 4, kind: input, shape index: {}]   ;;  %s2710_s5 = inlined_call_operand.vmem [shape: f32[1,8], index: 5, kind: input, shape index: {}]   ;;  %s2711_s6 = inlined_call_operand.vmem [shape: bf16[128,128], index: 6, kind: input, shape index: {}]   ;;  %s2712_s7 = inlined_call_operand.vmem [shape: f32[64,16], index: 7, kind: input, shape index: {}]   ;;  %s2713_s8 = inlined_call_operand.vmem [shape: f32[16,64], index: 8, kind: input, shape index: {}]   ;;  %s2714_s9 = inlined_call_operand.vmem [shape: f32[1,16], index: 9, kind: input, shape index: {}]   ;;  %s2715_s10 = inlined_call_operand.vmem [shape: f32[1,16], index: 10, kind: input, shape index: {}]   ;;  %s2716_s11 = inlined_call_operand.vmem [shape: bf16[64,384], index: 11, kind: input, shape index: {}]   ;;  %s2717_s12 = inlined_call_operand.vmem [shape: f32[128,32], index: 12, kind: input, shape index: {}]   ;;  %s2718_s13 = inlined_call_operand.vmem [shape: f32[32,128], index: 13, kind: input, shape index: {}]   ;;  %s2719_s14 = inlined_call_operand.vmem [shape: f32[1,32], index: 14, kind: input, shape index: {}]   ;;  %s2720_s15 = inlined_call_operand.vmem [shape: f32[1,32], index: 15, kind: input, shape index: {}]   ;;  %s2721_s16 = inlined_call_operand.vmem [shape: bf16[128,4], index: 16, kind: input, shape index: {}]   ;;  %s2722_s17 = inlined_call_operand.<no memory space> [shape: f32[1,1], index: 17, kind: input, shape index: {}]   ;;  %s2723_s18 = inlined_call_operand.vmem [shape: f32[2,8,64], index: 18, kind: output, shape index: {0}]   ;;  %s2724_s19 = inlined_call_operand.vmem [shape: f32[2,4,64], index: 19, kind: output, shape index: {1}]   ;;  %s2725_s20 = inlined_call_operand.vmem [shape: f32[2,4,128], index: 20, kind: output, shape index: {2}]   ;;  %s2726_s21 = inlined_call_operand.hbm [shape: f32[2,4,4], index: 21, kind: output, shape index: {3}]  }
   0x1   :  { %2729 = sst [smem:[#allocation6_spill]] %s2705_s0  ;;  %v27_v0 = vstv %s2722_s17 }
   0x2   :  { %2730 = sst [smem:[#allocation7_spill]] %s2706_s1  ;;  %28 = vst [vmem:[#allocation2] sm:$0x1] %v27_v0 }
   0x3   :  { %2731 = sst [smem:[#allocation8_spill]] %s2707_s2 }
   0x4   :  { %2732 = sst [smem:[#allocation9_spill]] %s2708_s3 }
   0x5   :  { %2733 = sst [smem:[#allocation10_spill]] %s2709_s4 }
   0x6   :  { %2734 = sst [smem:[#allocation11_spill]] %s2710_s5 }
   0x7   :  { %s2735_s3 = sld [smem:[#allocation7_spill]]  ;;  %v2097_v2 = vmov 0.0   ;;  %vm2098_vm0 = vmmov 0  }
   0x8   :  { %1791 = vmatprep.subr.bf16.mxu0 %v2097_v2  ;;  %1807 = vmatprep.mubr.msk.bf16.mxu0 %vm2098_vm0, %v2097_v2 }
   0x9   :  { %1827 = vmatprep.mubr.msk.f32.mxu1 %vm2098_vm0, %v2097_v2 }
   0xd   :  { %v2026_v1 = vld [vmem:[%s2735_s3] sm:$0xff]   ;;  %v2027_v3 = vld [vmem:[%s2735_s3 + $0x8] sm:$0xff]   ;;  %v2028_v4 = vld [vmem:[%s2735_s3 + $0x10] sm:$0xff]  }
   0xe   :  { %1792 = vmatpush3.bf16.msra.mxu0 %v2026_v1  ;;  %v2029_v5 = vld [vmem:[%s2735_s3 + $0x18] sm:$0xff]   ;;  %v2030_v6 = vld [vmem:[%s2735_s3 + $0x20] sm:$0xff]   ;;  %v2031_v7 = vld [vmem:[%s2735_s3 + $0x28] sm:$0xff]  }
   0xf   :  { %1793 = vmatprep.subr.bf16.mxu0 %v2097_v2  ;;  %v2032_v8 = vld [vmem:[%s2735_s3 + $0x30] sm:$0xff]  }
  0x12   :  { %1794 = vmatpush3.bf16.msra.mxu0 %v2027_v3 }
  0x13   :  { %1795 = vmatprep.subr.bf16.mxu0 %v2097_v2 }
  0x16   :  { %1796 = vmatpush3.bf16.msra.mxu0 %v2028_v4 }
  0x17   :  { %1797 = vmatprep.subr.bf16.mxu0 %v2097_v2 }
  0x1a   :  { %1798 = vmatpush3.bf16.msra.mxu0 %v2029_v5 }
  0x1b   :  { %1799 = vmatprep.subr.bf16.mxu0 %v2097_v2 }
  0x1e   :  { %1800 = vmatpush3.bf16.msra.mxu0 %v2030_v6 }
  0x1f   :  { %1801 = vmatprep.subr.bf16.mxu0 %v2097_v2 }
  0x22   :  { %1802 = vmatpush3.bf16.msra.mxu0 %v2031_v7 }
  0x23   :  { %1803 = vmatprep.subr.bf16.mxu0 %v2097_v2 }
  0x24   :  { %29 = vsyncpa [#allocation4], 0  ;;  %v2033_v9 = vld [vmem:[%s2735_s3 + $0x38] sm:$0xff]   ;;  %s2736_s29 = sld [smem:[#allocation6_spill]]  ;;  %s2737_s4 = sld [smem:[#allocation8_spill]]  ;;  %v2099_v14 = vmov 0.0|0.0   ;;  %v180_v31 = vlaneseq }
  0x25   :  { %1959 = vmatprep.subr.bf16.mxu1 %v2099_v14  ;;  %vm184_vm1 = vcmask 1040384   ;;  %s2100_s24 = smov 64   ;;  %vm200_vm3 = vcmask 523264   ;;  %vm233_vm4 = vcmask 1041409   ;;  %vm238_vm5 = vcmask 1043459   ;;  %s2738_s5 = sld [smem:[#allocation9_spill]] }
  0x26   :  { %1804 = vmatpush3.bf16.msra.mxu0 %v2032_v8  ;;  %v2293_v32 = vshrl.u32 %v180_v31, 7  ;;  %vm241_vm6 = vcmask 1041408   ;;  %s2739_s23 = sld [smem:[#allocation10_spill]]  ;;  %s2740_s25 = sld [smem:[#allocation11_spill]]  ;;  %vm358_vm7 = vcmask 64512   ;;  %v2037_v31 = vld [vmem:[%s2711_s6 + $0x10] sm:$0xff]  }
  0x27   :  { %1805 = vmatprep.subr.bf16.mxu0 %v2097_v2  ;;  %vm558_vm10 = vcmask 1042434   ;;  %vm561_vm11 = vcmask 1044484   ;;  %vm563_vm12 = vcmask 1045509   ;;  %vm565_vm13 = vcmask 1046534   ;;  %s2104_s0 = smov [#allocation3]  }
  0x28   :  { %vm195_vm2 = vcmp.eq.s32.totalorder %v2293_v32, 0  ;;  %vm567_vm14 = vcmask 1047559   ;;  %vm733_vm15 = vcmask 519168  }
  0x2a   :  { %v2034_v10 = vld [vmem:[%s2736_s29] sm:$0xff]   ;;  %1806 = vmatpush3.bf16.msra.mxu0 %v2033_v9  ;;  %v244_v12 = vld [vmem:[%s2737_s4 + $0x8] sm:$0xff]  ;;  %v245_v16 = vld [vmem:[%s2737_s4 + $0x10] sm:$0xff] }
  0x2b   :  { %1830 = vmatprep.subr.mxu0 %v2097_v2  ;;  %v243_v11 = vld [vmem:[%s2737_s4] sm:$0xff]  ;;  %v246_v17 = vld [vmem:[%s2737_s4 + $0x18] sm:$0xff]  ;;  %v248_v25 = vld [vmem:[%s2737_s4 + $0x28] sm:$0xff] }
  0x2c   :  { %v1960_v13 = vpack.c.bf16 %v244_v12, %v243_v11  ;;  %v1963_v20 = vpack.c.bf16 %v246_v17, %v245_v16  ;;  %v247_v24 = vld [vmem:[%s2737_s4 + $0x20] sm:$0xff]  ;;  %v249_v28 = vld [vmem:[%s2737_s4 + $0x30] sm:$0xff]  ;;  %v250_v29 = vld [vmem:[%s2737_s4 + $0x38] sm:$0xff]  ;;  %s1646_s4 = sshll.u32 %s2104_s0, 4  ;;  %s1647_s4 = int_to_ptr.vmem [resolvable:$true] %s1646_s4 }
  0x2d   :  { %1808 = vmatmul.mubr.bf16.vlgmr.msra.gmra.mrb[0].mxu0 %v2034_v10  ;;  %v1966_v27 = vpack.c.bf16 %v248_v25, %v247_v24  ;;  %v1969_v30 = vpack.c.bf16 %v250_v29, %v249_v28  ;;  %v357_v10 = vld [vmem:[%s2738_s5] sm:$0xff]  ;;  %s2073_s30 = scalar_lea.vmem %s1647_s4, 128  ;;  %p2078_p1 = scmp.lt.s32.totalorder %s1647_s4, %s1647_s4 }
  0x2e   :  { %1832 = vmatprep.mubr.msk.f32.mxu0 %vm2098_vm0, %v2097_v2  ;;  %1961 = vmatpush3.bf16.msra.mxu1 %v1960_v13  ;;  %v1674_v24 = vld [vmem:[%s2740_s25] ss:$0 sm:$0xff]  ;;  %p2074_p0 = scmp.ne.s32.totalorder %s1647_s4, %s2073_s30  ;;  %p2079_p2 = scmp.lt.s32.totalorder %s2073_s30, %s2073_s30 }
  0x2f   :  { %1962 = vmatprep.subr.bf16.mxu1 %v2099_v14  ;;  %1831 = vmatpush3.msra.mxu0 %v357_v10  ;;  %v2035_v29 = vld [vmem:[%s2711_s6] sm:$0xff]  }
  0x30   :  { %1971 = vmatprep.subr.bf16.mxu0 %v2099_v14  ;;  %p2080_p3 = por %p2079_p2, %p2078_p1 }
  0x32   :  { %1964 = vmatpush3.bf16.msra.mxu1 %v1963_v20  ;;  %v1673_v20 = vld [vmem:[%s2739_s23] ss:$0 sm:$0xff]  ;;  %p2081_p4 = pnand %p2080_p3, %p2074_p0 }
  0x33   :  { %1965 = vmatprep.subr.bf16.mxu1 %v2099_v14 }
  0x36   :  { %1967 = vmatpush3.bf16.msra.mxu1 %v1966_v27 }
  0x37   :  { %1968 = vmatprep.subr.bf16.mxu1 %v2099_v14 }
  0x3a   :  { %1970 = vmatpush3.bf16.msra.mxu1 %v1969_v30  ;;  %v2036_v30 = vld [vmem:[%s2711_s6 + $0x8] sm:$0xff]  }
  0x3b   :  { %1835 = vmatprep.subr.bf16.mxu1 %v2097_v2 }
 0x100   :  { %v173_v15 = vpop.f32.mrb[0].mxu0 }
 0x101   :  { %v1809_v18 = vpop.f32.mrb[1].mxu0  ;;  %v185_v19 = vrot.slane %v173_v15, 7 }
 0x102   :  { %v176_v21 = vpop.f32.mrb[2].mxu0 }
 0x103   :  { %v186_v22 = vrot.slane %v176_v21, 7  ;;  %188 = vrot.lane.b32.xlu0 %v185_v19, %s2100_s24  ;;  %v1810_v23 = vpop.f32.mrb[3].mxu0 }
 0x105   :  { %v187_v26 = vsel %vm184_vm1, %v185_v19, %v186_v22 }
 0x107   :  { %190 = vrot.lane.b32.xlu0 %v187_v26, %s2100_s24 }
 0x175   :  { %v189_v33 = vpop.permute.xlu0 %188 }
 0x176   :  { %v194_v34 = vsel %vm184_vm1, 0.0, %v189_v33  ;;  %v2038_v33 = vld [vmem:[%s2711_s6 + $0x18] sm:$0xff]  }
 0x177   :  { %v196_v35 = vsel %vm195_vm2, 0.0, %v194_v34  ;;  %v2039_v34 = vld [vmem:[%s2711_s6 + $0x20] sm:$0xff]  }
 0x178   :  { %v2299_v36 = vadd.f32 %v196_v35, %v173_v15  ;;  %v2040_v35 = vld [vmem:[%s2711_s6 + $0x28] sm:$0xff]  }
 0x179   :  { %v191_v37 = vpop.permute.xlu0 %190 }
 0x17a   :  { %v201_v38 = vsel %vm200_vm3, %v2299_v36, 0.0  ;;  %v215_v39 = vmul.f32 %v2299_v36, %v2299_v36  ;;  %v197_v40 = vsel %vm195_vm2, 0.0, %v191_v37  ;;  %v2041_v37 = vld [vmem:[%s2711_s6 + $0x30] sm:$0xff]  }
 0x17b   :  { %v202_v41 = vrot.slane %v201_v38, 4  ;;  %v2307_v42 = vadd.f32 %v197_v40, %v176_v21 }
 0x17c   :  { %v217_v43 = vsel %vm200_vm3, %v215_v39, 0.0 }
 0x17d   :  { %v203_v44 = vadd.f32 %v202_v41, %v201_v38  ;;  %v218_v45 = vrot.slane %v217_v43, 4  ;;  %v208_v46 = vsel %vm200_vm3, %v2307_v42, 0.0  ;;  %v216_v47 = vmul.f32 %v2307_v42, %v2307_v42 }
 0x17e   :  { %v209_v48 = vrot.slane %v208_v46, 4  ;;  %v2101_v38 = vmov 1966171168  }
 0x17f   :  { %v204_v49 = vrot.slane %v203_v44, 2  ;;  %v219_v50 = vadd.f32 %v218_v45, %v217_v43  ;;  %v224_v51 = vsel %vm200_vm3, %v216_v47, 0.0  ;;  %v434_v39 = vunpack.c.l.s4 %v2101_v38 }
 0x180   :  { %v210_v52 = vadd.f32 %v209_v48, %v208_v46  ;;  %v225_v53 = vrot.slane %v224_v51, 4  ;;  %v2102_v47 = vmov 1983009808  }
 0x181   :  { %v220_v54 = vrot.slane %v219_v50, 2  ;;  %v205_v55 = vadd.f32 %v204_v49, %v203_v44  ;;  %v435_v40 = vunpack.c.0.s8 %v434_v39  ;;  %v2366_v44 = vsub.s32 0, %v2293_v32 }
 0x182   :  { %v211_v56 = vrot.slane %v210_v52, 2  ;;  %v226_v57 = vadd.f32 %v225_v53, %v224_v51  ;;  %v493_v48 = vunpack.c.l.s4 %v2102_v47 }
 0x183   :  { %v221_v58 = vadd.f32 %v220_v54, %v219_v50  ;;  %v206_v61 = vrot.slane %v205_v55, 1  ;;  %v2363_v41 = vsub.s32 %v435_v40, %v2293_v32 }
 0x184   :  { %v212_v59 = vadd.f32 %v211_v56, %v210_v52  ;;  %v227_v60 = vrot.slane %v226_v57, 2  ;;  %v494_v54 = vunpack.c.0.s8 %v493_v48 }
 0x185   :  { %v222_v0 = vrot.slane %v221_v58, 1  ;;  %v207_v4 = vadd.f32 %v206_v61, %v205_v55 }
 0x186   :  { %v213_v62 = vrot.slane %v212_v59, 1  ;;  %v228_v63 = vadd.f32 %v227_v60, %v226_v57 }
 0x187   :  { %v223_v5 = vadd.f32 %v222_v0, %v221_v58 }
 0x188   :  { %v214_v1 = vadd.f32 %v213_v62, %v212_v59  ;;  %v229_v3 = vrot.slane %v228_v63, 1  ;;  %v497_v62 = vsub.s32 %v494_v54, %v2293_v32  ;;  %v773_v54 = vld [vmem:[%s2712_s7] sm:$0xff] }
 0x18a   :  { %v230_v6 = vadd.f32 %v229_v3, %v228_v63  ;;  %v234_v7 = vsel %vm233_vm4, %v214_v1, %v207_v4 }
 0x18c   :  { %v239_v8 = vsel %vm238_vm5, %v230_v6, %v223_v5  ;;  %v2042_v6 = vld [vmem:[%s2711_s6 + $0x38] sm:$0xff]  }
 0x18d   :  { %v242_v9 = vsel %vm241_vm6, %v234_v7, %v239_v8 }
 0x18e   :  { %1828 = vmatmul.mubr.msk.f32.vlgmr.msra.gmra.mrb[0].mxu1 %vm200_vm3, %v242_v9 }
 0x18f   :  { %1851 = vmatprep.mubr.msk.bf16.mxu1 %vm2098_vm0, %v2097_v2  ;;  %1836 = vmatpush3.bf16.msra.mxu1 %v2035_v29 }
 0x190   :  { %1837 = vmatprep.subr.bf16.mxu1 %v2097_v2 }
 0x193   :  { %1838 = vmatpush3.bf16.msra.mxu1 %v2036_v30 }
 0x194   :  { %1839 = vmatprep.subr.bf16.mxu1 %v2097_v2 }
 0x197   :  { %1840 = vmatpush3.bf16.msra.mxu1 %v2037_v31 }
 0x198   :  { %1841 = vmatprep.subr.bf16.mxu1 %v2097_v2 }
 0x19b   :  { %1842 = vmatpush3.bf16.msra.mxu1 %v2038_v33 }
 0x19c   :  { %1843 = vmatprep.subr.bf16.mxu1 %v2097_v2 }
 0x19f   :  { %1844 = vmatpush3.bf16.msra.mxu1 %v2039_v34 }
 0x1a0   :  { %1845 = vmatprep.subr.bf16.mxu1 %v2097_v2 }
 0x1a3   :  { %1846 = vmatpush3.bf16.msra.mxu1 %v2040_v35 }
 0x1a4   :  { %1847 = vmatprep.subr.bf16.mxu1 %v2097_v2 }
 0x1a7   :  { %1848 = vmatpush3.bf16.msra.mxu1 %v2041_v37 }
 0x1a8   :  { %1849 = vmatprep.subr.bf16.mxu1 %v2097_v2 }
 0x1ab   :  { %1850 = vmatpush3.bf16.msra.mxu1 %v2042_v6 }
 0x1ac   :  { %1881 = vmatprep.subr.bf16.mxu1 %v2097_v2 }
 0x261   :  { %v320_v11 = vpop.f32.mrb[0].mxu1 }
 0x262   :  { %v324_v12 = vmul.f32 0.015625, %v320_v11  ;;  %v1829_v13 = vpop.f32.mrb[1].mxu1 }
 0x264   :  { %v325_v15 = vmul.f32 %v324_v12, %v324_v12 }
 0x266   :  { %v327_v16 = vrot.slane %v325_v15, 6 }
 0x268   :  { %v329_v17 = vsub.f32 %v324_v12, %v327_v16 }
 0x26a   :  { %v330_v18 = vmax.f32 %v329_v17, 0.0 }
 0x26c   :  { %v331_v19 = vadd.f32 1e-05, %v330_v18 }
 0x26e   :  { %2067 = vrsqrt.f32 %v331_v19 }
 0x278   :  { %v2068_v21 = vpop.eup %2067 }
 0x279   :  { %v340_v22 = vmul.f32 %v2068_v21, %v1673_v20 }
 0x27b   :  { %v343_v23 = vrot.slane %v340_v22, 2 }
 0x27d   :  { %v345_v25 = vmul.f32 %v343_v23, %v324_v12 }
 0x27f   :  { %v352_v26 = vsub.f32 %v1674_v24, %v345_v25 }
 0x281   :  { %v354_v27 = vrot.slane %v352_v26, 6 }
 0x283   :  { %v356_v28 = vsel %vm241_vm6, %v343_v23, %v354_v27 }
 0x284   :  { %1833 = vmatmul.mubr.msk.f32.vlgmr.msra.gmra.mrb[4].mxu0 %vm358_vm7, %v356_v28  ;;  %vm889_vm7 = vcmask 130048  }
 0x285   :  { %1871 = vmatprep.mubr.msk.f32.mxu0 %vm2098_vm0, %v2097_v2 }
 0x357   :  { %v428_v43 = vpop.f32.mrb[4].mxu0 }
 0x358   :  { %v439_v45 = vrot.slane %v428_v43, %v2363_v41  ;;  %v1834_v46 = vpop.f32.mrb[5].mxu0 }
 0x35a   :  { %v440_v49 = vcombine.high %v439_v45, %v439_v45  ;;  %v447_v50 = vrot.slane %v439_v45, %v2363_v41 }
 0x35c   :  { %v454_v51 = vrot.slane %v440_v49, %v2363_v41  ;;  %v458_v52 = vrot.slane %v447_v50, %v2366_v44  ;;  %v467_v53 = vcombine.high %v447_v50, %v447_v50 }
 0x35e   :  { %v462_v55 = vrot.slane %v454_v51, %v2366_v44  ;;  %v465_v56 = vmul.f32 %v458_v52, %v2299_v36  ;;  %v468_v57 = vcombine.high %v454_v51, %v454_v51  ;;  %v472_v58 = vrot.slane %v467_v53, %v2366_v44 }
 0x360   :  { %v466_v59 = vmul.f32 %v462_v55, %v2307_v42  ;;  %v476_v60 = vrot.slane %v468_v57, %v2366_v44  ;;  %v479_v61 = vadd.f32 %v472_v58, %v465_v56  ;;  %v572_v42 = vsub.s32 1, %v2293_v32  ;;  %v774_v55 = vld [vmem:[%s2712_s7 + $0x8] sm:$0xff] }
 0x361   :  { %v1972_v56 = vpack.c.bf16 %v774_v55, %v773_v54  ;;  %v888_v54 = vld [vmem:[%s2713_s8 + $0x8] sm:$0xff] }
 0x362   :  { %v480_v63 = vadd.f32 %v476_v60, %v466_v59  ;;  %vm481_vm8 = vcmp.ge.f32.partialorder %v479_v61, 0.0  ;;  %v483_v0 = vmul.f32 0.2, %v479_v61 }
 0x363   :  { %1973 = vmatpush3.bf16.msra.mxu0 %v1972_v56 }
 0x364   :  { %vm482_vm9 = vcmp.ge.f32.partialorder %v480_v63, 0.0  ;;  %v484_v1 = vmul.f32 0.2, %v480_v63  ;;  %v485_v3 = vsel %vm481_vm8, %v479_v61, %v483_v0  ;;  %1974 = vmatprep.subr.bf16.mxu0 %v2099_v14  ;;  %v775_v61 = vld [vmem:[%s2712_s7 + $0x10] sm:$0xff] }
 0x365   :  { %487 = vst.msk [vmem:[%s2723_s18] sm:$0xff] %vm200_vm3, %v485_v3  ;;  %v491_v36 = vcombine.high %v485_v3, %v485_v3  ;;  %v498_v4 = vrot.slane %v485_v3, %v497_v62  ;;  %v778_v3 = vld [vmem:[%s2712_s7 + $0x28] sm:$0xff] }
 0x366   :  { %v486_v5 = vsel %vm482_vm9, %v480_v63, %v484_v1  ;;  %v777_v1 = vld [vmem:[%s2712_s7 + $0x20] sm:$0xff] }
 0x367   :  { %488 = vst.msk [vmem:[%s2723_s18 + $0x8] sm:$0xff] %vm200_vm3, %v486_v5  ;;  %v505_v7 = vrot.slane %v491_v36, %v497_v62  ;;  %v506_v8 = vcombine.high %v498_v4, %v498_v4  ;;  %v508_v9 = vcombine.high %v486_v5, %v486_v5  ;;  %v515_v10 = vrot.slane %v486_v5, %v497_v62 }
 0x368   :  { %v573_v13 = vrot.slane %v498_v4, %v572_v42  ;;  %v528_v23 = vrot.slane %v498_v4, %v2366_v44  ;;  %v1978_v36 = vpack.c.bf16 %v778_v3, %v777_v1  ;;  %v779_v4 = vld [vmem:[%s2712_s7 + $0x30] sm:$0xff] }
 0x369   :  { %v507_v11 = vcombine.high %v505_v7, %v505_v7  ;;  %v522_v12 = vrot.slane %v508_v9, %v497_v62  ;;  %v577_v15 = vrot.slane %v506_v8, %v572_v42  ;;  %v532_v16 = vrot.slane %v506_v8, %v2366_v44  ;;  %v776_v62 = vld [vmem:[%s2712_s7 + $0x18] sm:$0xff] }
 0x36a   :  { %v523_v17 = vcombine.high %v515_v10, %v515_v10  ;;  %v581_v18 = vrot.slane %v505_v7, %v572_v42  ;;  %v536_v22 = vrot.slane %v505_v7, %v2366_v44  ;;  %v589_v24 = vrot.slane %v515_v10, %v572_v42 }
 0x36b   :  { %v524_v19 = vcombine.high %v522_v12, %v522_v12  ;;  %v585_v20 = vrot.slane %v507_v11, %v572_v42  ;;  %v602_v21 = vsel %vm233_vm4, %v577_v15, %v573_v13  ;;  %v540_v26 = vrot.slane %v507_v11, %v2366_v44 }
 0x36c   :  { %v603_v25 = vsel %vm558_vm10, %v581_v18, %v602_v21  ;;  %v593_v27 = vrot.slane %v523_v17, %v572_v42  ;;  %v597_v29 = vrot.slane %v522_v12, %v572_v42  ;;  %v557_v31 = vsel %vm233_vm4, %v532_v16, %v528_v23 }
 0x36d   :  { %v604_v28 = vsel %vm238_vm5, %v585_v20, %v603_v25  ;;  %v601_v33 = vrot.slane %v524_v19, %v572_v42  ;;  %v544_v35 = vrot.slane %v515_v10, %v2366_v44  ;;  %v559_v37 = vsel %vm558_vm10, %v536_v22, %v557_v31  ;;  %v780_v42 = vld [vmem:[%s2712_s7 + $0x38] sm:$0xff] }
 0x36e   :  { %v605_v30 = vsel %vm561_vm11, %v589_v24, %v604_v28  ;;  %v548_v39 = vrot.slane %v523_v17, %v2366_v44  ;;  %v560_v40 = vsel %vm238_vm5, %v540_v26, %v559_v37  ;;  %v552_v45 = vrot.slane %v522_v12, %v2366_v44 }
 0x36f   :  { %v606_v34 = vsel %vm563_vm12, %v593_v27, %v605_v30  ;;  %v562_v46 = vsel %vm561_vm11, %v544_v35, %v560_v40  ;;  %v556_v48 = vrot.slane %v524_v19, %v2366_v44  ;;  %v1975_v0 = vpack.c.bf16 %v776_v62, %v775_v61 }
 0x370   :  { %v607_v38 = vsel %vm565_vm13, %v597_v29, %v606_v34  ;;  %v564_v47 = vsel %vm563_vm12, %v548_v39, %v562_v46  ;;  %v1981_v5 = vpack.c.bf16 %v780_v42, %v779_v4  ;;  %v1686_v4 = vld [vmem:[%s2715_s10] ss:$0 sm:$0xff]  ;;  %vm1208_vm10 = vcmp.eq.s32.totalorder %v2293_v32, 3 }
 0x371   :  { %v608_v43 = vsel %vm567_vm14, %v601_v33, %v607_v38  ;;  %v566_v49 = vsel %vm565_vm13, %v552_v45, %v564_v47  ;;  %1976 = vmatpush3.bf16.msra.mxu0 %v1975_v0  ;;  %v1685_v0 = vld [vmem:[%s2714_s9] ss:$0 sm:$0xff]  ;;  %vm1216_vm11 = vcmask 1043456  }
 0x372   :  { %609 = vrot.lane.b32.xlu1 %v608_v43, %s2100_s24  ;;  %v568_v50 = vsel %vm567_vm14, %v556_v48, %v566_v49  ;;  %1977 = vmatprep.subr.bf16.mxu0 %v2099_v14 }
 0x375   :  { %1979 = vmatpush3.bf16.msra.mxu0 %v1978_v36 }
 0x376   :  { %1980 = vmatprep.subr.bf16.mxu0 %v2099_v14 }
 0x379   :  { %1982 = vmatpush3.bf16.msra.mxu0 %v1981_v5 }
 0x37a   :  { %1983 = vmatprep.subr.bf16.mxu0 %v2099_v14 }
 0x3e4   :  { %v610_v51 = vpop.permute.xlu1 %609 }
 0x3e5   :  { %v612_v52 = vsel %vm200_vm3, %v568_v50, %v610_v51 }
 0x3e6   :  { %v613_v53 = vpack.c.bf16 %v612_v52, %v612_v52 }
 0x3e8   :  { %1852 = vmatmul.mubr.bf16.vlgmr.msra.gmra.mrb[4].mxu1 %v613_v53  ;;  %v887_v53 = vld [vmem:[%s2713_s8] sm:$0xff] }
 0x3e9   :  { %1889 = vmatprep.mubr.msk.bf16.mxu1 %vm2098_vm0, %v2097_v2  ;;  %v1984_v55 = vpack.c.bf16 %v888_v54, %v887_v53  ;;  %v1259_v53 = vld [vmem:[%s2717_s12 + $0x18] sm:$0xff] }
 0x4bb   :  { %v712_v57 = vpop.f32.mrb[4].mxu1 }
 0x4bc   :  { %v719_v58 = vrot.slane %v712_v57, 7  ;;  %v1853_v59 = vpop.f32.mrb[5].mxu1  ;;  %v724_v10 = vcombine.high %v712_v57, %v712_v57 }
 0x4bd   :  { %v715_v60 = vpop.f32.mrb[6].mxu1 }
 0x4be   :  { %720 = vrot.lane.b32.xlu1 %v719_v58, %s2100_s24  ;;  %v1854_v63 = vpop.f32.mrb[7].mxu1 }
 0x530   :  { %v721_v6 = vpop.permute.xlu1 %720 }
 0x531   :  { %v723_v7 = vsel %vm184_vm1, 0.0, %v721_v6 }
 0x532   :  { %v727_v8 = vcombine.high %v723_v7, %v723_v7  ;;  %v729_v9 = vsel %vm195_vm2, 0.0, %v723_v7 }
 0x533   :  { %v2449_v11 = vadd.f32 %v729_v9, %v712_v57  ;;  %v2043_v9 = vld [vmem:[%s2716_s11] ss:$12 sps:$4 sm:$0xff]  }
 0x534   :  { %v730_v12 = vsel %vm195_vm2, 0.0, %v727_v8  ;;  %v2045_v8 = vld [vmem:[%s2716_s11 + $0x4] ss:$12 sps:$4 sm:$0xff]  }
 0x535   :  { %v2453_v13 = vadd.f32 %v730_v12, %v724_v10  ;;  %v734_v15 = vsel %vm733_vm15, %v2449_v11, 0.0  ;;  %v748_v16 = vmul.f32 %v2449_v11, %v2449_v11  ;;  %v2046_v10 = vld [vmem:[%s2716_s11 + $0x8] ss:$12 sps:$4 sm:$0xff]  }
 0x536   :  { %v735_v17 = vrot.slane %v734_v15, 4  ;;  %1882 = vmatpush3.bf16.msra.mxu1 %v2046_v10  ;;  %v2049_v12 = vld [vmem:[%s2716_s11 + $0x1c] ss:$12 sps:$4 sm:$0xff]  }
 0x537   :  { %v741_v18 = vsel %vm733_vm15, %v2453_v13, 0.0  ;;  %v749_v19 = vmul.f32 %v2453_v13, %v2453_v13  ;;  %v750_v20 = vsel %vm733_vm15, %v748_v16, 0.0  ;;  %1883 = vmatprep.subr.bf16.mxu1 %v2097_v2  ;;  %v2050_v16 = vld [vmem:[%s2716_s11 + $0x20] ss:$12 sps:$4 sm:$0xff]  }
 0x538   :  { %v736_v21 = vadd.f32 %v735_v17, %v734_v15  ;;  %v742_v22 = vrot.slane %v741_v18, 4  ;;  %v751_v23 = vrot.slane %v750_v20, 4  ;;  %v2047_v15 = vld [vmem:[%s2716_s11 + $0x18] ss:$12 sps:$4 sm:$0xff]   ;;  %v2053_v17 = vld [vmem:[%s2716_s11 + $0x34] ss:$12 sps:$4 sm:$0xff]  }
 0x539   :  { %v757_v24 = vsel %vm733_vm15, %v749_v19, 0.0  ;;  %v2054_v19 = vld [vmem:[%s2716_s11 + $0x38] ss:$12 sps:$4 sm:$0xff]  }
 0x53a   :  { %v737_v25 = vrot.slane %v736_v21, 2  ;;  %v743_v26 = vadd.f32 %v742_v22, %v741_v18  ;;  %v752_v27 = vadd.f32 %v751_v23, %v750_v20  ;;  %v758_v28 = vrot.slane %v757_v24, 4  ;;  %1884 = vmatpush3.bf16.msra.mxu1 %v2050_v16  ;;  %v2051_v18 = vld [vmem:[%s2716_s11 + $0x30] ss:$12 sps:$4 sm:$0xff]   ;;  %v2057_v20 = vld [vmem:[%s2716_s11 + $0x4c] ss:$12 sps:$4 sm:$0xff]  }
 0x53b   :  { %1885 = vmatprep.subr.bf16.mxu1 %v2097_v2  ;;  %v2058_v22 = vld [vmem:[%s2716_s11 + $0x50] ss:$12 sps:$4 sm:$0xff]   ;;  %v2103_v23 = vmov 0  }
 0x53c   :  { %v738_v29 = vadd.f32 %v737_v25, %v736_v21  ;;  %v744_v30 = vrot.slane %v743_v26, 2  ;;  %v753_v31 = vrot.slane %v752_v27, 2  ;;  %v759_v33 = vadd.f32 %v758_v28, %v757_v24  ;;  %v2055_v21 = vld [vmem:[%s2716_s11 + $0x48] ss:$12 sps:$4 sm:$0xff]   ;;  %2025 = vset.pattern.permute.xlu0 %v2103_v23 }
 0x53e   :  { %v745_v34 = vadd.f32 %v744_v30, %v743_v26  ;;  %v754_v35 = vadd.f32 %v753_v31, %v752_v27  ;;  %v760_v37 = vrot.slane %v759_v33, 2  ;;  %v739_v38 = vrot.slane %v738_v29, 1  ;;  %1886 = vmatpush3.bf16.msra.mxu1 %v2054_v19 }
 0x53f   :  { %1887 = vmatprep.subr.bf16.mxu1 %v2097_v2 }
 0x540   :  { %v746_v39 = vrot.slane %v745_v34, 1  ;;  %v755_v40 = vrot.slane %v754_v35, 1  ;;  %v761_v43 = vadd.f32 %v760_v37, %v759_v33  ;;  %v740_v47 = vadd.f32 %v739_v38, %v738_v29 }
 0x542   :  { %v747_v45 = vadd.f32 %v746_v39, %v745_v34  ;;  %v762_v46 = vrot.slane %v761_v43, 1  ;;  %v756_v48 = vadd.f32 %v755_v40, %v754_v35  ;;  %1888 = vmatpush3.bf16.msra.mxu1 %v2058_v22 }
 0x543   :  { %2010 = vmatprep.subr.bf16.mxu1 %v2099_v14 }
 0x544   :  { %v763_v49 = vadd.f32 %v762_v46, %v761_v43  ;;  %v766_v50 = vsel %vm233_vm4, %v747_v45, %v740_v47 }
 0x546   :  { %v770_v51 = vsel %vm238_vm5, %v763_v49, %v756_v48 }
 0x547   :  { %v772_v52 = vsel %vm241_vm6, %v766_v50, %v770_v51 }
 0x548   :  { %1872 = vmatmul.mubr.msk.f32.vlgmr.msra.gmra.mrb[6].mxu0 %vm200_vm3, %v772_v52  ;;  %v1258_v52 = vld [vmem:[%s2717_s12 + $0x10] sm:$0xff] }
 0x549   :  { %1878 = vmatprep.mubr.msk.f32.mxu0 %vm2098_vm0, %v2097_v2  ;;  %1985 = vmatpush3.bf16.msra.mxu0 %v1984_v55  ;;  %v1990_v54 = vpack.c.bf16 %v1259_v53, %v1258_v52  ;;  %v1260_v55 = vld [vmem:[%s2717_s12 + $0x20] sm:$0xff] }
 0x54a   :  { %1108 = vmatprep.subr.bf16.mxu0 %v2045_v8 }
 0x61b   :  { %v850_v56 = vpop.f32.mrb[6].mxu0 }
 0x61c   :  { %v854_v57 = vmul.f32 0.0625, %v850_v56  ;;  %v1873_v58 = vpop.f32.mrb[7].mxu0  ;;  %v1261_v56 = vld [vmem:[%s2717_s12 + $0x28] sm:$0xff] }
 0x61d   :  { %v1262_v58 = vld [vmem:[%s2717_s12 + $0x30] sm:$0xff] }
 0x61e   :  { %v855_v59 = vmul.f32 %v854_v57, %v854_v57 }
 0x620   :  { %v857_v60 = vrot.slane %v855_v59, 6  ;;  %v1263_v59 = vld [vmem:[%s2717_s12 + $0x38] sm:$0xff] }
 0x622   :  { %v859_v61 = vsub.f32 %v854_v57, %v857_v60  ;;  %v1996_v60 = vpack.c.bf16 %v1263_v59, %v1262_v58 }
 0x624   :  { %v860_v62 = vmax.f32 %v859_v61, 0.0  ;;  %v1264_v61 = vld [vmem:[%s2717_s12 + $0x40] sm:$0xff] }
 0x626   :  { %v861_v63 = vadd.f32 1e-05, %v860_v62  ;;  %v1265_v62 = vld [vmem:[%s2717_s12 + $0x48] sm:$0xff] }
 0x628   :  { %2069 = vrsqrt.f32 %v861_v63  ;;  %v1999_v63 = vpack.c.bf16 %v1265_v62, %v1264_v61 }
 0x632   :  { %v2070_v1 = vpop.eup %2069 }
 0x633   :  { %v870_v3 = vmul.f32 %v2070_v1, %v1685_v0  ;;  %v1266_v0 = vld [vmem:[%s2717_s12 + $0x50] sm:$0xff]  ;;  %v1267_v1 = vld [vmem:[%s2717_s12 + $0x58] sm:$0xff] }
 0x635   :  { %v873_v36 = vrot.slane %v870_v3, 2  ;;  %v2002_v3 = vpack.c.bf16 %v1267_v1, %v1266_v0 }
 0x637   :  { %v875_v42 = vmul.f32 %v873_v36, %v854_v57  ;;  %v1993_v57 = vpack.c.bf16 %v1261_v56, %v1260_v55 }
 0x639   :  { %v882_v5 = vsub.f32 %v1686_v4, %v875_v42  ;;  %v1269_v4 = vld [vmem:[%s2717_s12 + $0x68] sm:$0xff] }
 0x63b   :  { %v884_v6 = vrot.slane %v882_v5, 6  ;;  %v1270_v5 = vld [vmem:[%s2717_s12 + $0x70] sm:$0xff] }
 0x63d   :  { %v886_v7 = vsel %vm241_vm6, %v873_v36, %v884_v6  ;;  %v1268_v36 = vld [vmem:[%s2717_s12 + $0x60] sm:$0xff]  ;;  %v1271_v6 = vld [vmem:[%s2717_s12 + $0x78] sm:$0xff] }
 0x63e   :  { %1879 = vmatmul.mubr.msk.f32.vlgmr.msra.gmra.mrb[8].mxu0 %vm889_vm7, %v886_v7  ;;  %v2005_v42 = vpack.c.bf16 %v1269_v4, %v1268_v36  ;;  %v2008_v7 = vpack.c.bf16 %v1271_v6, %v1270_v5  ;;  %v1376_v5 = vld [vmem:[%s2718_s13 + $0x8] sm:$0xff] }
 0x63f   :  { %1109 = vmatpush1.bf16.msra.mxu0 %v2043_v9  ;;  %1140 = vmatprep.mubr.bf16.mxu0 %v2103_v23 }
 0x640   :  { %1110 = vmatprep.subr.bf16.mxu0 %v2049_v12 }
 0x643   :  { %1111 = vmatpush1.bf16.msra.mxu0 %v2047_v15 }
 0x644   :  { %1112 = vmatprep.subr.bf16.mxu0 %v2053_v17 }
 0x647   :  { %1113 = vmatpush1.bf16.msra.mxu0 %v2051_v18 }
 0x648   :  { %1114 = vmatprep.subr.bf16.mxu0 %v2057_v20 }
 0x64b   :  { %1115 = vmatpush1.bf16.msra.mxu0 %v2055_v21 }
 0x64c   :  { %1986 = vmatprep.subr.bf16.mxu0 %v2099_v14 }
 0x711   :  { %v959_v24 = vpop.f32.mrb[8].mxu0 }
 0x712   :  { %v970_v25 = vrot.slane %v959_v24, %v2363_v41  ;;  %v1880_v26 = vpop.f32.mrb[9].mxu0 }
 0x714   :  { %v971_v27 = vcombine.high %v970_v25, %v970_v25  ;;  %v978_v28 = vrot.slane %v970_v25, %v2363_v41 }
 0x716   :  { %v985_v29 = vrot.slane %v971_v27, %v2363_v41  ;;  %v989_v30 = vrot.slane %v978_v28, %v2366_v44  ;;  %v998_v31 = vcombine.high %v978_v28, %v978_v28 }
 0x718   :  { %v993_v33 = vrot.slane %v985_v29, %v2366_v44  ;;  %v996_v34 = vmul.f32 %v989_v30, %v2449_v11  ;;  %v999_v35 = vcombine.high %v985_v29, %v985_v29  ;;  %v1003_v37 = vrot.slane %v998_v31, %v2366_v44  ;;  %v1256_v11 = vld [vmem:[%s2717_s12] sm:$0xff] }
 0x71a   :  { %v997_v38 = vmul.f32 %v993_v33, %v2453_v13  ;;  %v1007_v39 = vrot.slane %v999_v35, %v2366_v44  ;;  %v1010_v40 = vadd.f32 %v1003_v37, %v996_v34  ;;  %v1257_v13 = vld [vmem:[%s2717_s12 + $0x8] sm:$0xff] }
 0x71b   :  { %v1987_v50 = vpack.c.bf16 %v1257_v13, %v1256_v11 }
 0x71c   :  { %v1011_v43 = vadd.f32 %v1007_v39, %v997_v38  ;;  %vm1012_vm8 = vcmp.ge.f32.partialorder %v1010_v40, 0.0  ;;  %v1014_v45 = vmul.f32 0.2, %v1010_v40 }
 0x71e   :  { %vm1013_vm9 = vcmp.ge.f32.partialorder %v1011_v43, 0.0  ;;  %v1015_v46 = vmul.f32 0.2, %v1011_v43  ;;  %v1016_v47 = vsel %vm1012_vm8, %v1010_v40, %v1014_v45 }
 0x71f   :  { %1018 = vst.msk [vmem:[%s2724_s19] sm:$0xf] %vm733_vm15, %v1016_v47 }
 0x720   :  { %v1017_v48 = vsel %vm1013_vm9, %v1011_v43, %v1015_v46 }
 0x721   :  { %1019 = vst.msk [vmem:[%s2724_s19 + $0x4] sm:$0xf] %vm733_vm15, %v1017_v48  ;;  %v1022_v49 = vcombine.low %v1016_v47, %v1017_v48 }
 0x723   :  { %v1024_v51 = vpack.c.bf16 %v1022_v49, %v1022_v49 }
 0x725   :  { %1700 = vmatmul.mubr.msk.bf16.vlgmr.msra.gmra.mrb[12].mxu0 %vm200_vm3, %v1024_v51  ;;  %1890 = vmatmul.mubr.msk.bf16.vlgmr.msra.gmra.mrb[8].mxu1 %vm200_vm3, %v1024_v51  ;;  %vm1206_vm3 = vcmask 1046528  }
 0x726   :  { %1988 = vmatpush3.bf16.msra.mxu0 %v1987_v50  ;;  %1925 = vmatprep.mubr.msk.f32.mxu0 %vm2098_vm0, %v2097_v2 }
 0x727   :  { %1989 = vmatprep.subr.bf16.mxu0 %v2099_v14  ;;  %1936 = vmatprep.mubr.msk.f32.mxu1 %vm2098_vm0, %v2097_v2 }
 0x72a   :  { %1991 = vmatpush3.bf16.msra.mxu0 %v1990_v54 }
 0x72b   :  { %1992 = vmatprep.subr.bf16.mxu0 %v2099_v14 }
 0x72e   :  { %1994 = vmatpush3.bf16.msra.mxu0 %v1993_v57 }
 0x72f   :  { %1995 = vmatprep.subr.bf16.mxu0 %v2099_v14 }
 0x732   :  { %1997 = vmatpush3.bf16.msra.mxu0 %v1996_v60 }
 0x733   :  { %1998 = vmatprep.subr.bf16.mxu0 %v2099_v14 }
 0x736   :  { %2000 = vmatpush3.bf16.msra.mxu0 %v1999_v63 }
 0x737   :  { %2001 = vmatprep.subr.bf16.mxu0 %v2099_v14 }
 0x73a   :  { %2003 = vmatpush3.bf16.msra.mxu0 %v2002_v3 }
 0x73b   :  { %2004 = vmatprep.subr.bf16.mxu0 %v2099_v14 }
 0x73e   :  { %2006 = vmatpush3.bf16.msra.mxu0 %v2005_v42  ;;  %v1375_v42 = vld [vmem:[%s2718_s13] sm:$0xff] }
 0x73f   :  { %2007 = vmatprep.subr.bf16.mxu0 %v2099_v14  ;;  %v2011_v6 = vpack.c.bf16 %v1376_v5, %v1375_v42 }
 0x741   :  { %2012 = vmatpush3.bf16.msra.mxu1 %v2011_v6 }
 0x742   :  { %2009 = vmatpush3.bf16.msra.mxu0 %v2008_v7  ;;  %2013 = vmatprep.subr.bf16.mxu1 %v2099_v14  ;;  %v1377_v7 = vld [vmem:[%s2718_s13 + $0x10] sm:$0xff] }
 0x7f8   :  { %v1142_v8 = vpop.f32.mrb[12].mxu0  ;;  %v1183_v9 = vpop.f32.mrb[8].mxu1 }
 0x7f9   :  { %v1204_v10 = vrot.slane %v1183_v9, 1  ;;  %v1144_v12 = vpop.f32.mrb[13].mxu0  ;;  %v1891_v15 = vpop.f32.mrb[9].mxu1  ;;  %v1194_v26 = vcombine.high %v1142_v8, %v1142_v8 }
 0x7fa   :  { %v1190_v16 = vrot.slane %v1144_v12, 7  ;;  %v1146_v17 = vpop.f32.mrb[14].mxu0  ;;  %v1186_v18 = vpop.f32.mrb[10].mxu1 }
 0x7fb   :  { %v1207_v19 = vsel %vm1206_vm3, %v1204_v10, 0.0  ;;  %v1147_v20 = vpop.f32.mrb[15].mxu0  ;;  %v1892_v21 = vpop.f32.mrb[11].mxu1 }
 0x7fc   :  { %v1192_v22 = vsel %vm184_vm1, 0.0, %v1190_v16  ;;  %v1210_v23 = vcombine.high %v1207_v19, %v1207_v19  ;;  %v1212_v28 = vsel %vm1208_vm10, 0.0, %v1207_v19  ;;  %v1702_v20 = vld [vmem:[%s2719_s14] ss:$0 sm:$0xff]  ;;  %vm1379_vm1 = vcmask 261120  }
 0x7fd   :  { %v1197_v24 = vcombine.high %v1192_v22, %v1192_v22  ;;  %v1199_v25 = vsel %vm195_vm2, 0.0, %v1192_v22 }
 0x7fe   :  { %v1201_v27 = vadd.f32 %v1199_v25, %v1142_v8  ;;  %v1213_v33 = vsel %vm1208_vm10, 0.0, %v1210_v23  ;;  %v1378_v8 = vld [vmem:[%s2718_s13 + $0x18] sm:$0xff] }
 0x7ff   :  { %v1200_v29 = vsel %vm195_vm2, 0.0, %v1197_v24  ;;  %v2014_v9 = vpack.c.bf16 %v1378_v8, %v1377_v7  ;;  %v1703_v24 = vld [vmem:[%s2720_s15] ss:$0 sm:$0xff] }
 0x800   :  { %v1202_v30 = vadd.f32 %v1200_v29, %v1194_v26  ;;  %v2609_v31 = vadd.f32 %v1212_v28, %v1201_v27  ;;  %v2059_v28 = vld [vmem:[%s2721_s16] sm:$0xff]  }
 0x801   :  { %2015 = vmatpush3.bf16.msra.mxu1 %v2014_v9 }
 0x802   :  { %v2611_v34 = vadd.f32 %v1213_v33, %v1202_v30  ;;  %v1217_v35 = vsel %vm1216_vm11, %v2609_v31, 0.0  ;;  %v1231_v37 = vmul.f32 %v2609_v31, %v2609_v31  ;;  %1939 = vmatprep.subr.bf16.mxu1 %v2097_v2  ;;  %v2060_v30 = vld [vmem:[%s2721_s16 + $0x8] sm:$0xff]   ;;  %v2061_v33 = vld [vmem:[%s2721_s16 + $0x10] sm:$0xff]  }
 0x803   :  { %v1218_v38 = vrot.slane %v1217_v35, 4 }
 0x804   :  { %v1224_v39 = vsel %vm1216_vm11, %v2611_v34, 0.0  ;;  %v1232_v40 = vmul.f32 %v2611_v34, %v2611_v34  ;;  %v1233_v32 = vsel %vm1216_vm11, %v1231_v37, 0.0  ;;  %v2063_v37 = vld [vmem:[%s2721_s16 + $0x20] sm:$0xff]  }
 0x805   :  { %v1219_v43 = vadd.f32 %v1218_v38, %v1217_v35  ;;  %v1225_v45 = vrot.slane %v1224_v39, 4  ;;  %v1234_v46 = vrot.slane %v1233_v32, 4  ;;  %v2062_v35 = vld [vmem:[%s2721_s16 + $0x18] sm:$0xff]   ;;  %v2064_v38 = vld [vmem:[%s2721_s16 + $0x28] sm:$0xff]  }
 0x806   :  { %v1240_v47 = vsel %vm1216_vm11, %v1232_v40, 0.0  ;;  %v2066_v40 = vld [vmem:[%s2721_s16 + $0x38] sm:$0xff]  }
 0x807   :  { %v1220_v11 = vrot.slane %v1219_v43, 2  ;;  %v1226_v13 = vadd.f32 %v1225_v45, %v1224_v39  ;;  %v1235_v48 = vadd.f32 %v1234_v46, %v1233_v32  ;;  %v1241_v49 = vrot.slane %v1240_v47, 4  ;;  %v2065_v39 = vld [vmem:[%s2721_s16 + $0x30] sm:$0xff]   ;;  %v1705_v32 = vld [vmem:[#allocation2] ss:$0 sm:$0xff] }
 0x808   :  { %1538 = vperm.xlu0 %2025, %v1705_v32  }
 0x809   :  { %v1221_v50 = vadd.f32 %v1220_v11, %v1219_v43  ;;  %v1227_v51 = vrot.slane %v1226_v13, 2  ;;  %v1236_v52 = vrot.slane %v1235_v48, 2  ;;  %v1242_v53 = vadd.f32 %v1241_v49, %v1240_v47 }
 0x80b   :  { %v1228_v54 = vadd.f32 %v1227_v51, %v1226_v13  ;;  %v1237_v55 = vadd.f32 %v1236_v52, %v1235_v48  ;;  %v1243_v56 = vrot.slane %v1242_v53, 2  ;;  %v1222_v57 = vrot.slane %v1221_v50, 1 }
 0x80d   :  { %v1229_v58 = vrot.slane %v1228_v54, 1  ;;  %v1238_v59 = vrot.slane %v1237_v55, 1  ;;  %v1244_v60 = vadd.f32 %v1243_v56, %v1242_v53  ;;  %v1223_v63 = vadd.f32 %v1222_v57, %v1221_v50 }
 0x80f   :  { %v1230_v61 = vadd.f32 %v1229_v58, %v1228_v54  ;;  %v1245_v62 = vrot.slane %v1244_v60, 1  ;;  %v1239_v0 = vadd.f32 %v1238_v59, %v1237_v55 }
 0x811   :  { %v1246_v1 = vadd.f32 %v1245_v62, %v1244_v60  ;;  %v1249_v3 = vsel %vm233_vm4, %v1230_v61, %v1223_v63  ;;  %vm1632_vm4 = vcmask 27648  }
 0x813   :  { %v1253_v36 = vsel %vm238_vm5, %v1246_v1, %v1239_v0 }
 0x814   :  { %v1255_v4 = vsel %vm241_vm6, %v1249_v3, %v1253_v36 }
 0x815   :  { %1926 = vmatmul.mubr.f32.vlgmr.msra.gmra.mrb[10].mxu0 %v1255_v4 }
 0x8e8   :  { %v1338_v10 = vpop.f32.mrb[10].mxu0 }
 0x8e9   :  { %v1342_v12 = vmul.f32 0.0625, %v1338_v10  ;;  %v1927_v15 = vpop.f32.mrb[11].mxu0 }
 0x8eb   :  { %v1343_v16 = vmul.f32 %v1342_v12, %v1342_v12 }
 0x8ed   :  { %v1345_v17 = vrot.slane %v1343_v16, 6 }
 0x8ef   :  { %v1347_v18 = vsub.f32 %v1342_v12, %v1345_v17 }
 0x8f1   :  { %v1348_v19 = vmax.f32 %v1347_v18, 0.0 }
 0x8f3   :  { %v1349_v14 = vadd.f32 1e-05, %v1348_v19 }
 0x8f5   :  { %2071 = vrsqrt.f32 %v1349_v14 }
 0x8ff   :  { %v2072_v21 = vpop.eup %2071 }
 0x900   :  { %v1358_v22 = vmul.f32 %v2072_v21, %v1702_v20 }
 0x902   :  { %v1361_v23 = vrot.slane %v1358_v22, 2 }
 0x904   :  { %v1363_v25 = vmul.f32 %v1361_v23, %v1342_v12 }
 0x906   :  { %v1370_v26 = vsub.f32 %v1703_v24, %v1363_v25 }
 0x908   :  { %v1372_v27 = vrot.slane %v1370_v26, 6 }
 0x90a   :  { %v1374_v29 = vsel %vm241_vm6, %v1361_v23, %v1372_v27 }
 0x90b   :  { %1937 = vmatmul.mubr.msk.f32.vlgmr.msra.gmra.mrb[2].mxu1 %vm1379_vm1, %v1374_v29 }
 0x90c   :  { %1940 = vmatpush3.bf16.msra.mxu1 %v2059_v28  ;;  %1955 = vmatprep.mubr.msk.bf16.mxu1 %vm2098_vm0, %v2097_v2 }
 0x90d   :  { %1941 = vmatprep.subr.bf16.mxu1 %v2097_v2 }
 0x910   :  { %1942 = vmatpush3.bf16.msra.mxu1 %v2060_v30 }
 0x911   :  { %1943 = vmatprep.subr.bf16.mxu1 %v2097_v2 }
 0x914   :  { %1944 = vmatpush3.bf16.msra.mxu1 %v2061_v33 }
 0x915   :  { %1945 = vmatprep.subr.bf16.mxu1 %v2097_v2 }
 0x918   :  { %1946 = vmatpush3.bf16.msra.mxu1 %v2062_v35 }
 0x919   :  { %1947 = vmatprep.subr.bf16.mxu1 %v2097_v2 }
 0x91c   :  { %1948 = vmatpush3.bf16.msra.mxu1 %v2063_v37 }
 0x91d   :  { %1949 = vmatprep.subr.bf16.mxu1 %v2097_v2 }
 0x920   :  { %1950 = vmatpush3.bf16.msra.mxu1 %v2064_v38 }
 0x921   :  { %1951 = vmatprep.subr.bf16.mxu1 %v2097_v2 }
 0x924   :  { %1952 = vmatpush3.bf16.msra.mxu1 %v2065_v39 }
 0x925   :  { %1953 = vmatprep.subr.bf16.mxu1 %v2097_v2 }
 0x928   :  { %1954 = vmatpush3.bf16.msra.mxu1 %v2066_v40 }
 0x9de   :  { %v1449_v43 = vpop.f32.mrb[2].mxu1 }
 0x9df   :  { %v1460_v45 = vrot.slane %v1449_v43, %v2363_v41  ;;  %v1938_v46 = vpop.f32.mrb[3].mxu1 }
 0x9e1   :  { %v1461_v47 = vcombine.high %v1460_v45, %v1460_v45  ;;  %v1468_v11 = vrot.slane %v1460_v45, %v2363_v41 }
 0x9e3   :  { %v1475_v13 = vrot.slane %v1461_v47, %v2363_v41  ;;  %v1479_v48 = vrot.slane %v1468_v11, %v2366_v44  ;;  %v1488_v49 = vcombine.high %v1468_v11, %v1468_v11 }
 0x9e5   :  { %v1483_v50 = vrot.slane %v1475_v13, %v2366_v44  ;;  %v1486_v51 = vmul.f32 %v1479_v48, %v2609_v31  ;;  %v1489_v2 = vcombine.high %v1475_v13, %v1475_v13  ;;  %v1493_v52 = vrot.slane %v1488_v49, %v2366_v44 }
 0x9e7   :  { %v1487_v53 = vmul.f32 %v1483_v50, %v2611_v34  ;;  %v1497_v54 = vrot.slane %v1489_v2, %v2366_v44  ;;  %v1500_v55 = vadd.f32 %v1493_v52, %v1486_v51  ;;  %v1539_v44 = vpop.permute.xlu0 %1538 }
 0x9e9   :  { %v1501_v56 = vadd.f32 %v1497_v54, %v1487_v53  ;;  %v1504_v57 = vmul.f32 0.2, %v1500_v55  ;;  %vm1502_vm0 = vcmp.ge.f32.partialorder %v1500_v55, 0.0 }
 0x9eb   :  { %vm1503_vm2 = vcmp.ge.f32.partialorder %v1501_v56, 0.0  ;;  %v1505_v41 = vmul.f32 0.2, %v1501_v56  ;;  %v1506_v58 = vsel %vm1502_vm0, %v1500_v55, %v1504_v57 }
 0x9ec   :  { %1508 = vst [vmem:[%s2725_s20] sm:$0xf] %v1506_v58 }
 0x9ed   :  { %v1507_v59 = vsel %vm1503_vm2, %v1501_v56, %v1505_v41 }
 0x9ee   :  { %1509 = vst [vmem:[%s2725_s20 + $0x4] sm:$0xf] %v1507_v59  ;;  %v1512_v31 = vcombine.low %v1506_v58, %v1507_v59 }
 0x9f0   :  { %v1514_v34 = vpack.c.bf16 %v1512_v31, %v1512_v31 }
 0x9f2   :  { %1956 = vmatmul.mubr.bf16.vlgmr.msra.gmra.mrb[12].mxu1 %v1514_v34 }
 0xac5   :  { %v1623_v60 = vpop.f32.mrb[12].mxu1 }
 0xac6   :  { %v1624_v61 = vadd.f32 %v1623_v60, %v1539_v44  ;;  %v1957_v62 = vpop.f32.mrb[13].mxu1 }
 0xac7   :  { %v1626_v63 = vpop.f32.mrb[14].mxu1 }
 0xac8   :  { %v1630_v0 = vcombine.high %v1624_v61, %v1624_v61  ;;  %1633 = vst.msk [vmem:[#allocation3] sm:$0xf] %vm1632_vm4, %v1624_v61  ;;  %v1958_v1 = vpop.f32.mrb[15].mxu1 }
 0xaca   :  { %1634 = vst.msk [vmem:[#allocation3 + $0x4] sm:$0xf] %vm1632_vm4, %v1630_v0 }
 0xacb   :  { %2084 = shalt.err (!%p2081_p4)
}
 0xacc   :  { %s2085_s5 = scalar_lea.hbm %s2726_s21, 128 }
 0xacd   :  { %p2086_p5 = scmp.ne.s32.totalorder %s2726_s21, %s2085_s5  ;;  %p2089_p6 = scmp.lt.u32.totalorder %s2085_s5, %s2726_s21 }
 0xacf   :  { %p2091_p7 = pnand %p2089_p6, %p2086_p5 }
 0xad1   :  { %2094 = shalt.err (!%p2091_p7)
}
 0xad2   :  { %s2105_s9 = smov 4  }
 0xad3   :  { %1652 = dma.vmem_to_hbm [thread:$0]  %s1647_s4, 128, %s2726_s21, [#allocation4], %s2100_s24, %s2100_s24, %s2105_s9  }
 0xad4   :  { %2095 = dma.done.wait [#allocation4], 128  }
 0xad5   :  { %2096 = vsyncadd [#allocation4], 4294967168 }
 0xad6   :  { %1662 = vsyncpa [#allocation4], 1 }

</bundles_post_ra>
